<compile_context>
chip_gen: v5e
topology: v5e:2x2
jax: 0.10.0
libtpu: 0.0.40
codegen_flags: <defaults>
</compile_context>

<pallas_src>
import functools

import jax
import jax.numpy as jnp
from jax.experimental import pallas as pl
from jax.experimental.pallas import tpu as pltpu


def _tv_loss_kernel(x_ref, kspatial_ref, ktemporal_ref, out_ref, *,
                    inv_norm, hard_values, lo, hi, threshold):
    """One grid step == B channel-clips, flattened to rows of (B*T, H*W)."""
    x = x_ref[...]                                    # native dtype (bf16 stays bf16)
    rows, hw = x.shape

    # Spatial zero-padded box sum: one (B*T, HW) @ (HW, HW) MXU matmul.
    # The band is exact 0/1, so HIGHEST only protects x's f32 mantissa; bf16
    # inputs use DEFAULT (single MXU pass, nothing to protect).
    # NOTE(v5e): if loss-level tolerance allows, DEFAULT for f32 inputs cuts
    # the extra HIGHEST MXU passes on v5e's slower MXU.
    prec = (jax.lax.Precision.HIGHEST if x.dtype == jnp.float32
            else jax.lax.Precision.DEFAULT)
    spatial = jnp.dot(x, kspatial_ref[...], precision=prec,
                      preferred_element_type=jnp.float32)

    # Temporal zero-padded box sum: block-banded (B*T, B*T) @ (B*T, HW) matmul
    # (kron(I_B, band_t) keeps the B clips independent).  Tiny matmul; HIGHEST
    # keeps the already-accumulated f32 spatial sums exact.
    box = jnp.dot(ktemporal_ref[...], spatial,
                  precision=jax.lax.Precision.HIGHEST,
                  preferred_element_type=jnp.float32)

    soft = box * jnp.float32(inv_norm)
    if hard_values:
        trg = jnp.where(soft < jnp.float32(threshold),
                        jnp.float32(lo), jnp.float32(hi))
    else:
        trg = soft

    diff = jnp.abs(x.astype(jnp.float32) - trg)

    # Lane-dense partial sums: fold the row axis down to 8 sublanes so the
    # output store is a full (8, HW) unmasked vst block.
    if rows % 8 == 0:
        partial = jnp.sum(diff.reshape(rows // 8, 8, hw), axis=0)
    else:  # degenerate tiny-B*T shapes only
        partial = jnp.concatenate(
            [jnp.sum(diff, axis=0, keepdims=True),
             jnp.zeros((7, hw), jnp.float32)], axis=0)
    out_ref[...] = partial.reshape(1, 8, hw)


def _band_matrix(n, radius, dtype):
    idx = jnp.arange(n, dtype=jnp.int32)
    return (jnp.abs(idx[:, None] - idx[None, :]) <= radius).astype(dtype)


def _pick_block_clips(nc, t, hw, itemsize):
    """Clips per grid step: ~0.5-2 MiB input blocks, small (B*T)^2 temporal
    band, and >= 2 grid steps so both v7x TensorCores get work."""
    clip_bytes = t * hw * itemsize
    b = max(1, min(nc, (2 * 1024 * 1024) // max(clip_bytes, 1)))
    b = max(1, min(b, 512 // max(t, 1)))          # (B*T)^2 f32 band <= 1 MiB
    if nc >= 2:
        b = min(b, nc // 2)                       # keep >= 2 grid steps
    while nc % b:                                 # largest divisor of nc <= b
        b -= 1
    return b


def total_variance_loss(values, *, spatial_kernels, temporal_kernels,
                        num_channels, hard_values=False, limits=(0.0, 1.0),
                        threshold=None):
    """JAX/Pallas equivalent of TotalVarianceLoss.forward (returns a scalar)."""
    assert len(limits) == 2 and limits[0] < limits[1]
    assert temporal_kernels % 2 == 1 and spatial_kernels % 2 == 1, (
        "odd kernel sizes required (implied by the module's 'same' padding)")
    if hard_values:
        assert threshold is not None, "hard_values=True requires a threshold"

    N, C, T, H, W = values.shape
    assert C == num_channels
    HW = H * W
    # TODO(synk): for large H*W (> ~1024) the kron spatial band gets too big;
    # switch to separable band_h / band_w matmuls on a (T*H, W)-shaped tile.
    assert HW <= 1024, "kron spatial band path is sized for small H*W"

    pt = (temporal_kernels - 1) // 2
    ps = (spatial_kernels - 1) // 2

    NC = N * C
    B = _pick_block_clips(NC, T, HW, values.dtype.itemsize)
    grid = NC // B
    BT = B * T

    # Lane-dense repack: trailing axis is H*W, row axis is (n, c, t).  No
    # dtype cast, no padding: `values` crosses HBM exactly once, natively.
    x2d = values.reshape(NC * T, HW)

    # Resident 0/1 band matrices (constant index_map -> DMA'd once, held in
    # VMEM across all grid steps).
    band_dtype = values.dtype
    kspatial = jnp.kron(_band_matrix(H, ps, band_dtype),
                        _band_matrix(W, ps, band_dtype))        # (HW, HW)
    ktemporal = jnp.kron(jnp.eye(B, dtype=jnp.float32),
                         _band_matrix(T, pt, jnp.float32))      # (BT, BT)

    kernel = functools.partial(
        _tv_loss_kernel,
        inv_norm=1.0 / (temporal_kernels * spatial_kernels * spatial_kernels),
        hard_values=hard_values,
        lo=float(limits[0]), hi=float(limits[1]),
        threshold=float(threshold) if threshold is not None else 0.0)

    # VMEM budget: double-buffered input block + resident bands + f32
    # intermediates (spatial/box/trg/diff + partial).  Cap at 48 MiB so the
    # same sizing is safe on v7x's 64 MiB physical VMEM.
    est = (2 * BT * HW * values.dtype.itemsize
           + HW * HW * values.dtype.itemsize
           + BT * BT * 4
           + 6 * BT * HW * 4)
    vmem_limit = int(min(48 * 1024 * 1024, max(32 * 1024 * 1024, 2 * est)))

    partials = pl.pallas_call(
        kernel,
        out_shape=jax.ShapeDtypeStruct((grid, 8, HW), jnp.float32),
        grid_spec=pltpu.PrefetchScalarGridSpec(
            num_scalar_prefetch=0,
            grid=(grid,),
            in_specs=[
                pl.BlockSpec((BT, HW), lambda i: (i, 0)),     # B clips / step
                pl.BlockSpec((HW, HW), lambda i: (0, 0)),     # resident band
                pl.BlockSpec((BT, BT), lambda i: (0, 0)),     # resident band
            ],
            out_specs=pl.BlockSpec((1, 8, HW), lambda i: (i, 0, 0))),
        compiler_params=pltpu.CompilerParams(
            dimension_semantics=("parallel",),                # megacore on v7x
            vmem_limit_bytes=vmem_limit),
    )(x2d, kspatial, ktemporal)

    return jnp.sum(partials) / (N * C * T * H * W)


def _reference(values, *, spatial_kernels, temporal_kernels, num_channels,
               hard_values, limits, threshold):
    """Pure-JAX reference mirroring the PyTorch module (f32, high precision)."""
    values = values.astype(jnp.float32)
    C = num_channels
    pt = (temporal_kernels - 1) // 2
    ps = (spatial_kernels - 1) // 2
    w = jnp.ones((C, 1, temporal_kernels, spatial_kernels, spatial_kernels),
                 jnp.float32) / (temporal_kernels * spatial_kernels * spatial_kernels)
    soft = jax.lax.conv_general_dilated(
        values, w, window_strides=(1, 1, 1),
        padding=((pt, pt), (ps, ps), (ps, ps)),
        dimension_numbers=('NCDHW', 'OIDHW', 'NCDHW'),
        feature_group_count=C,
        precision=jax.lax.Precision.HIGHEST)
    if hard_values:
        trg = jnp.where(soft < threshold,
                        jnp.float32(limits[0]), jnp.float32(limits[1]))
    else:
        trg = soft
    return jnp.mean(jnp.abs(values - trg))


if __name__ == "__main__":
    key = jax.random.PRNGKey(0)
    N, C, T, H, W = 2, 4, 8, 16, 16
    k1, k2 = jax.random.split(key)

    cfg = dict(spatial_kernels=3, temporal_kernels=3, num_channels=C,
               limits=(0.0, 1.0), threshold=0.5)

    # Dyadic-rational test values (multiples of 1/64): box sums are exact in
    # f32 on every TPU generation / matmul precision, so the tolerance check
    # is robust.
    values = jnp.floor(jax.random.uniform(k1, (N, C, T, H, W)) * 64.0) / 64.0
    values = values.astype(jnp.float32)

    # soft-target path, f32 input
    out_soft = jax.block_until_ready(
        total_variance_loss(values, hard_values=False, **cfg))
    ref_soft = _reference(values, hard_values=False, **cfg)
    assert jnp.allclose(out_soft, ref_soft, atol=1e-5, rtol=1e-5), (out_soft, ref_soft)

    # soft-target path, bf16 input (half the HBM DMA bytes; bf16 fed straight
    # to the MXU, f32 accumulation in-kernel)
    vals_bf16 = values.astype(jnp.bfloat16)
    out_bf16 = jax.block_until_ready(
        total_variance_loss(vals_bf16, hard_values=False, **cfg))
    ref_bf16 = _reference(vals_bf16.astype(jnp.float32), hard_values=False, **cfg)
    assert jnp.allclose(out_bf16, ref_bf16, atol=1e-5, rtol=1e-5), (out_bf16, ref_bf16)

    # hard-target path with binary inputs (e.g. masks): box averages are k/27,
    # far from the 0.5 threshold, so no boundary-flip flakiness.
    vbin = (jax.random.uniform(k2, (N, C, T, H, W)) > 0.5).astype(jnp.float32)
    out_hard = jax.block_until_ready(
        total_variance_loss(vbin, hard_values=True, **cfg))
    ref_hard = _reference(vbin, hard_values=True, **cfg)
    assert jnp.allclose(out_hard, ref_hard, atol=1e-5, rtol=1e-5), (out_hard, ref_hard)

    print("KERNEL_OK")
</pallas_src>

<mosaic_0001>
module attributes {stable_mosaic.version = 11 : i64} {
  func.func @_tv_loss_kernel(%arg0: i32, %arg1: memref<32x256xf32, #tpu.memory_space<vmem>>, %arg2: memref<256x256xf32, #tpu.memory_space<vmem>>, %arg3: memref<32x32xf32, #tpu.memory_space<vmem>>, %arg4: memref<1x8x256xf32, #tpu.memory_space<vmem>>) attributes {dimension_semantics = [#tpu.dimension_semantics<parallel>], iteration_bounds = array<i64: 2>, scalar_prefetch = 0 : i64, scratch_operands = 0 : i64, tpu.core_type = #tpu.core_type<tc>, window_params = [{transform_indices = @transform_0, window_bounds = array<i64: 32, 256>}, {pipeline_mode = #tpu.pipeline_mode<synchronous>, transform_indices = @transform_1, window_bounds = array<i64: 256, 256>}, {pipeline_mode = #tpu.pipeline_mode<synchronous>, transform_indices = @transform_2, window_bounds = array<i64: 32, 32>}, {transform_indices = @transform_3, window_bounds = array<i64: 1, 8, 256>}]} {
    %c0 = arith.constant 0 : index
    %c0_0 = arith.constant 0 : index
    %0 = vector.load %arg1[%c0, %c0_0] : memref<32x256xf32, #tpu.memory_space<vmem>>, vector<32x256xf32>
    %c0_1 = arith.constant 0 : index
    %c0_2 = arith.constant 0 : index
    %1 = vector.load %arg2[%c0_1, %c0_2] : memref<256x256xf32, #tpu.memory_space<vmem>>, vector<256x256xf32>
    %cst = arith.constant dense<0.000000e+00> : vector<32x256xf32>
    %2 = tpu.matmul %0, %1, %cst {dimension_numbers = #tpu.dot_dimension_numbers<[1], [0], [0], [1], [0, 0, 1, 1], [], []>, precision = #tpu.contract_precision<fp32>} : vector<32x256xf32>, vector<256x256xf32>, vector<32x256xf32> -> vector<32x256xf32>
    %c0_3 = arith.constant 0 : index
    %c0_4 = arith.constant 0 : index
    %3 = vector.load %arg3[%c0_3, %c0_4] : memref<32x32xf32, #tpu.memory_space<vmem>>, vector<32x32xf32>
    %cst_5 = arith.constant dense<0.000000e+00> : vector<32x256xf32>
    %4 = tpu.matmul %3, %2, %cst_5 {dimension_numbers = #tpu.dot_dimension_numbers<[1], [0], [0], [1], [0, 0, 1, 1], [], []>, precision = #tpu.contract_precision<fp32>} : vector<32x32xf32>, vector<32x256xf32>, vector<32x256xf32> -> vector<32x256xf32>
    %cst_6 = arith.constant 0.0370370373 : f32
    %5 = vector.broadcast %cst_6 : f32 to vector<32x256xf32>
    %6 = arith.mulf %4, %5 : vector<32x256xf32>
    %7 = arith.subf %0, %6 : vector<32x256xf32>
    %8 = math.absf %7 : vector<32x256xf32>
    %9 = vector.shape_cast %8 : vector<32x256xf32> to vector<4x8x256xf32>
    %cst_7 = arith.constant dense<0.000000e+00> : vector<8x256xf32>
    %10 = vector.multi_reduction <add>, %9, %cst_7 [0] : vector<4x8x256xf32> to vector<8x256xf32>
    %11 = vector.shape_cast %10 : vector<8x256xf32> to vector<1x8x256xf32>
    %c0_8 = arith.constant 0 : index
    %c0_9 = arith.constant 0 : index
    %c0_10 = arith.constant 0 : index
    %12 = vector.load %arg4[%c0_8, %c0_9, %c0_10] : memref<1x8x256xf32, #tpu.memory_space<vmem>>, vector<1x8x256xf32>
    tpu.vector_store %arg4[%c0_8, %c0_9, %c0_10], %11 {strides = array<i32>} : memref<1x8x256xf32, #tpu.memory_space<vmem>>, vector<1x8x256xf32>,
    return
  }
  func.func @transform_0(%arg0: i32) -> (i32, i32) {
    %c0_i32 = arith.constant 0 : i32
    %c0_i32_0 = arith.constant 0 : i32
    return %arg0, %c0_i32 : i32, i32
  }
  func.func @transform_1(%arg0: i32) -> (i32, i32) {
    %c0_i32 = arith.constant 0 : i32
    %c0_i32_0 = arith.constant 0 : i32
    %c0_i32_1 = arith.constant 0 : i32
    return %c0_i32, %c0_i32_0 : i32, i32
  }
  func.func @transform_2(%arg0: i32) -> (i32, i32) {
    %c0_i32 = arith.constant 0 : i32
    %c0_i32_0 = arith.constant 0 : i32
    %c0_i32_1 = arith.constant 0 : i32
    return %c0_i32, %c0_i32_0 : i32, i32
  }
  func.func @transform_3(%arg0: i32) -> (i32, i32, i32) {
    %c0_i32 = arith.constant 0 : i32
    %c0_i32_0 = arith.constant 0 : i32
    %c0_i32_1 = arith.constant 0 : i32
    return %arg0, %c0_i32, %c0_i32_0 : i32, i32, i32
  }
}

</mosaic_0001>

<bundles_post_ra>
// kernel: tpu_custom_call.1
= control target key start
LH: loop header
LB: loop body
LE: loop exit
PB: predicated region body
PF: predicated region fallthrough
CT: control target
= control target key end

     0   :  { %8 = vsyncpa [#allocation3], 0  ;;  %s4568_s0 = inlined_call_operand.hbm [shape: f32[64,256], index: 0, kind: input, shape index: {}]   ;;  %s4569_s1 = inlined_call_operand.hbm [shape: f32[256,256], index: 1, kind: input, shape index: {}]   ;;  %s4570_s2 = inlined_call_operand.hbm [shape: f32[32,32], index: 2, kind: input, shape index: {}]   ;;  %s4571_s3 = inlined_call_operand.hbm [shape: f32[2,8,256], index: 3, kind: output, shape index: {}]  }
   0x1   :  { %10 = vsyncpa [#allocation3 + $0x1], 0 }
   0x2   :  { %11 = vsyncpa [#allocation6], 0 }
   0x3   :  { %12 = vsyncpa [#allocation4], 0 }
   0x4   :  { %14 = vsyncpa [#allocation4 + $0x1], 0  ;;  %s3034_s12 = smov 0   ;;  %s3036_s13 = smov 0  }
   0x5   :  { %s3038_s14 = smov 0   ;;  %s3040_s15 = smov 0  }
   0x6 LB: > { %s3055_s16 = sadd.s32 4294967295, %s3006_s15   ;;  %s2745_s17 = sadd.s32 4294967294, %s3006_s15   ;;  %s3006_s15 = sphi %s3040_s15, %s4798_s15   ;;  %s3002_s14 = sphi %s3038_s14, %s4797_s14   ;;  %s2998_s13 = sphi %s3036_s13, %s4796_s13   ;;  %s2994_s12 = sphi %s3034_s12, %s4795_s12  }
   0x7   : > { %p40_p0 = scmp.ne.s32.totalorder %s2998_s13, %s2994_s12  ;;  %p41_p1 = scmp.eq.s32.totalorder %s3055_s16, 0 }
   0x8   : > { %p106_p2 = scmp.eq.s32.totalorder %s3055_s16, 1  ;;  %p112_p3 = scmp.eq.s32.totalorder %s2745_s17, 1 }
   0x9   : > { %p3064_p4 = por %p41_p1, %p40_p0  ;;  %p2746_p5 = scmp.ge.s32.totalorder %s3006_s15, 1 }
   0xa   : > { %p3069_p6 = por %p112_p3, %p40_p0  ;;  %p119_p7 = scmp.lt.s32.totalorder %s3006_s15, 3 }
   0xb   : > { %s130_s22 = sshll.u32 %s4569_s1, 4  ;;  %s3008_s24 = smov [#allocation5]   ;;  %s131_s22 = int_to_ptr.hbm [resolvable:$true] %s130_s22 }
   0xc   : > { %p3077_p8 = pnand %p2746_p5, %p119_p7  ;;  %s132_s25 = sshll.u32 %s3008_s24, 4  ;;  %s133_s25 = int_to_ptr.vmem [resolvable:$true] %s132_s25 }
   0xd   : > { %s144_s28 = sshll.u32 %s4570_s2, 4  ;;  %s3009_s29 = smov 256   ;;  %s145_s28 = int_to_ptr.hbm [resolvable:$true] %s144_s28 }
   0xe   : > { %p2779_p9 = pneg %p3077_p8  ;;  %s3010_s30 = smov 16  }
   0xf   : > { %s3011_s4 = smov [#allocation7]   ;;  %s3012_s6 = smov 128  }
  0x10   : > { %p2780_p10 = pnand %p2779_p9, %p41_p1  ;;  %s146_s5 = sshll.u32 %s3011_s4, 4  ;;  %s147_s5 = int_to_ptr.vmem [resolvable:$true] %s146_s5 }
  0x11   : > { %s3013_s7 = smov 8   ;;  %s3093_s8 = sadd.s32 1, %s3006_s15  }
  0x12   : > { %2782 = dma.hbm_to_vmem [thread:$0]  (!%p2780_p10), %s131_s22, 8192, %s133_s25, [#allocation6], %s3009_s29, %s3009_s29, %s3010_s30  }
  0x13   : > { %2785 = dma.hbm_to_vmem [thread:$0]  (!%p2780_p10), %s145_s28, 512, %s147_s5, [#allocation6], %s3012_s6, %s3012_s6, %s3013_s7  }
  0x14   : > { %s24_s9 = ssub.s32 %s3006_s15, %s3093_s8  ;;  %s27_s10 = sadd.s32 1, %s3002_s14 }
  0x15   : > { %p25_p12 = scmp.eq.s32.totalorder %s24_s9, 0  ;;  %p34_p13 = scmp.ne.s32.totalorder %s3002_s14, %s2998_s13 }
  0x16   : > { %p35_p0 = scmp.eq.s32.totalorder %s3006_s15, 0  ;;  %p2796_p7 = scmp.lt.s32.totalorder %s3006_s15, 2 }
  0x17   : > { %s3102_s11 = scalar_select %p25_p12, %s3002_s14, %s27_s10  }
  0x18   : > { %p36_p3 = por %p35_p0, %p34_p13  ;;  %p3106_p5 = por %p106_p2, %p34_p13 }
  0x19   : > { %s160_s20 = sand.u32 1, %s3002_s14   ;;  %s2765_s22 = sshll.u32 %s3006_s15, 6 }
  0x1a   : > { %s2750_s21 = sshll.u32 %s160_s20, 6  ;;  %s170_s26 = scalar_lea.hbm %s4568_s0, %s2765_s22 }
  0x1b   : > { %s164_s27 = scalar_lea.vmem [#allocation2], %s2750_s21  ;;  %s171_s4 = sshll.u32 %s170_s26, 4  ;;  %s172_s4 = int_to_ptr.hbm [resolvable:$true] %s171_s4 }
  0x1c   : > { %s173_s28 = sshll.u32 %s164_s27, 4  ;;  %p3116_p9 = pnand %p2796_p7, %p36_p3  ;;  %s174_s28 = int_to_ptr.vmem [resolvable:$true] %s173_s28 }
  0x1d   : > { %s161_s6 = scalar_lea.sflag [#allocation3], %s160_s20  ;;  %s2906_s7 = sshra.s32 %s172_s4, 4  ;;  %s2907_s7 = int_to_ptr.hbm [resolvable:$true] %s2906_s7 }
  0x1e   : > { %s2908_s9 = scalar_lea.hbm %s2907_s7, 64  ;;  %p2910_p10 = pneg %p3116_p9 }
  0x1f   : > { %p2909_p2 = scmp.ne.s32.totalorder %s2907_s7, %s2908_s9  ;;  %s2913_s22 = scalar_lea.hbm %s4568_s0, 128 }
  0x20   : > { %p2914_p0 = scmp.lt.s32.totalorder %s2907_s7, %s4568_s0  ;;  %p2915_p3 = scmp.lt.s32.totalorder %s2913_s22, %s2908_s9 }
  0x21   : > { %p2911_p12 = pnand %p2910_p10, %p2909_p2 }
  0x22   : > { %p2916_p7 = por %p2915_p3, %p2914_p0 }
  0x23   : > { %p2912_p13 = pneg %p2911_p12 }
  0x25   : > { %p2917_p11 = pnand %p2916_p7, %p2912_p13 }
  0x27   : > { %2920 = shalt.err (!%p2917_p11)
}
  0x28   : > { %2789 = dma.hbm_to_vmem [thread:$0]  (!%p3116_p9), %s172_s4, 1024, %s174_s28, %s161_s6, %s3009_s29, %s3009_s29, %s3010_s30  }
  0x29   : > { %185 = sbr.rel (%p3077_p8) target bundleno = 668 (0x29c), region = 32 }
  0x2e   : > { %s3136_s20 = sand.u32 1, %s2998_s13  }
  0x2f   : > { %s2755_s26 = sshll.u32 %s3136_s20, 6  ;;  %s188_s27 = scalar_lea.sflag [#allocation3], %s3136_s20 }
  0x30   : > { %s3140_s7 = scalar_lea.vmem [#allocation2], %s2755_s26 }
  0x31   : > { %2981 = dma.done.wait (%p3064_p4), %s188_s27, 1024  }
  0x32   : > { %2983 = vsyncadd (%p3064_p4), %s188_s27, 4294966272 }
  0x33   : > { %2985 = dma.done.wait (%p41_p1), [#allocation6], 8704  }
  0x34   : > { %2987 = vsyncadd (%p41_p1), [#allocation6], 4294958592  ;;  %v264_v0 = vld [vmem:[#allocation5 + $0xf0] sm:$0xff]  ;;  %v262_v1 = vld [vmem:[#allocation5 + $0xe0] sm:$0xff]  ;;  %vm2038_vm0 = vcmask 261120   ;;  %s2758_s18 = sshll.u32 %s3136_s20, 4 }
  0x35   : > { %v260_v2 = vld [vmem:[#allocation5 + $0xd0] sm:$0xff]  ;;  %v3150_v3 = vand.u32 4294901760, %v264_v0  ;;  %v3152_v4 = vand.u32 4294901760, %v262_v1  ;;  %v258_v6 = vld [vmem:[#allocation5 + $0xc0] sm:$0xff]  ;;  %s4526_s23 = scalar_lea.vmem [#allocation8], %s2758_s18  ;;  %s2766_s29 = sshll.u32 %s3055_s16, 4 }
  0x36   : > { %v3154_v5 = vand.u32 4294901760, %v260_v2  ;;  %v256_v7 = vld [vmem:[#allocation5 + $0xb0] sm:$0xff]  ;;  %v254_v8 = vld [vmem:[#allocation5 + $0xa0] sm:$0xff]  ;;  %v3156_v9 = vand.u32 4294901760, %v258_v6  ;;  %s2651_s4 = scalar_lea.hbm %s4571_s3, %s2766_s29  ;;  %s2653_s5 = sshll.u32 %s4526_s23, 4  ;;  %s2654_s5 = int_to_ptr.vmem [resolvable:$true] %s2653_s5 }
  0x37   : > { %v3158_v10 = vand.u32 4294901760, %v256_v7  ;;  %v3160_v11 = vand.u32 4294901760, %v254_v8  ;;  %v252_v12 = vld [vmem:[#allocation5 + $0x90] sm:$0xff]  ;;  %v250_v13 = vld [vmem:[#allocation5 + $0x80] sm:$0xff]  ;;  %299 = vmatpush.msra.mxu0 %v3150_v3  ;;  %v3164_v14 = vsub.f32 %v264_v0, %v3150_v3  ;;  %v3167_v15 = vsub.f32 %v262_v1, %v3152_v4  ;;  %546 = vmatpush.msra.mxu3 %v3150_v3  ;;  %s2655_s6 = sshll.u32 %s2651_s4, 4  ;;  %s2640_s16 = scalar_lea.sflag [#allocation4], %s3136_s20  ;;  %s2656_s6 = int_to_ptr.hbm [resolvable:$true] %s2655_s6 }
  0x38   : > { %v3171_v16 = vsub.f32 %v260_v2, %v3154_v5  ;;  %v3173_v17 = vand.u32 4294901760, %v252_v12  ;;  %v248_v18 = vld [vmem:[#allocation5 + $0x70] sm:$0xff]  ;;  %v3176_v19 = vsub.f32 %v258_v6, %v3156_v9  ;;  %v3189_v25 = vand.u32 4294901760, %v250_v13  ;;  %v246_v26 = vld [vmem:[#allocation5 + $0x60] sm:$0xff]  ;;  %s2950_s9 = sshra.s32 %s2656_s6, 4  ;;  %s2956_s24 = scalar_lea.hbm %s4571_s3, 32  ;;  %s2951_s9 = int_to_ptr.hbm [resolvable:$true] %s2950_s9 }
  0x39   : > { %v3179_v20 = vsub.f32 %v256_v7, %v3158_v10  ;;  %v3182_v21 = vsub.f32 %v254_v8, %v3160_v11  ;;  %301 = vmatpush.msra.mxu0 %v3152_v4  ;;  %478 = vmatpush.msra.mxu2 %v3164_v14  ;;  %v4587_v22 = vand.u32 4294901760, %v3164_v14  ;;  %v4585_v23 = vand.u32 4294901760, %v3167_v15  ;;  %v244_v36 = vld [vmem:[#allocation5 + $0x50] sm:$0xff]  ;;  %v242_v41 = vld [vmem:[#allocation5 + $0x40] sm:$0xff]  ;;  %s2952_s10 = scalar_lea.hbm %s2951_s9, 16  ;;  %p2957_p11 = scmp.lt.s32.totalorder %s2951_s9, %s4571_s3 }
  0x3a   : > { %v4583_v24 = vand.u32 4294901760, %v3171_v16  ;;  %548 = vmatpush.msra.mxu3 %v3152_v4  ;;  %v4582_v27 = vand.u32 4294901760, %v3176_v19  ;;  %v3193_v28 = vand.u32 4294901760, %v248_v18  ;;  %v3196_v29 = vsub.f32 %v252_v12, %v3173_v17  ;;  %v240_v49 = vld [vmem:[#allocation5 + $0x30] sm:$0xff]  ;;  %v238_v55 = vld [vmem:[#allocation5 + $0x20] sm:$0xff]  ;;  %p2953_p1 = scmp.ne.s32.totalorder %s2951_s9, %s2952_s10  ;;  %p2958_p9 = scmp.lt.s32.totalorder %s2956_s24, %s2952_s10 }
  0x3b   : > { %303 = vmatpush.msra.mxu0 %v3154_v5  ;;  %481 = vmatpush.msra.mxu2 %v3167_v15  ;;  %v366_v30 = vsub.f32 %v3164_v14, %v4587_v22  ;;  %v372_v31 = vsub.f32 %v3167_v15, %v4585_v23  ;;  %v4581_v33 = vand.u32 4294901760, %v3179_v20  ;;  %v3211_v34 = vand.u32 4294901760, %v246_v26  ;;  %v226_v56 = vld [vmem:[%s3140_s7] sm:$0xff]  ;;  %v236_v62 = vld [vmem:[#allocation5 + $0x10] sm:$0xff] }
  0x3c   : > { %v378_v32 = vsub.f32 %v3171_v16, %v4583_v24  ;;  %550 = vmatpush.msra.mxu3 %v3154_v5  ;;  %v4579_v35 = vand.u32 4294901760, %v3182_v21  ;;  %v384_v39 = vsub.f32 %v3176_v19, %v4582_v27  ;;  %v3220_v40 = vsub.f32 %v250_v13, %v3189_v25  ;;  %v296_v6 = vld [vmem:[#allocation5 + $0x1f0] sm:$0xff]  ;;  %v234_v12 = vld [vmem:[#allocation5] sm:$0xff]  ;;  %p2954_p4 = pnand %p2953_p1, %p3106_p5  ;;  %p2959_p2 = por %p2958_p9, %p2957_p11 }
  0x3d   : > { %305 = vmatpush.msra.mxu0 %v3156_v9  ;;  %v367_v37 = vand.u32 4294901760, %v366_v30  ;;  %484 = vmatpush.msra.mxu2 %v3171_v16  ;;  %v373_v38 = vand.u32 4294901760, %v372_v31  ;;  %v4578_v42 = vand.u32 4294901760, %v3196_v29  ;;  %v3225_v43 = vsub.f32 %v248_v18, %v3193_v28  ;;  %v228_v31 = vld [vmem:[%s3140_s7 + $0x10] sm:$0xff]  ;;  %v286_v24 = vld [vmem:[#allocation5 + $0x1a0] sm:$0xff] }
  0x3e   : > { %552 = vmatpush.msra.mxu3 %v3156_v9  ;;  %v379_v44 = vand.u32 4294901760, %v378_v32  ;;  %v390_v45 = vsub.f32 %v3179_v20, %v4581_v33  ;;  %v3231_v46 = vand.u32 4294901760, %v244_v36  ;;  %v396_v47 = vsub.f32 %v3182_v21, %v4579_v35  ;;  %v284_v22 = vld [vmem:[#allocation5 + $0x190] sm:$0xff]  ;;  %p2955_p8 = pneg %p2954_p4 }
  0x3f   : > { %307 = vmatpush.msra.mxu0 %v3158_v10  ;;  %368 = vmatpush.msra.mxu1 %v367_v37  ;;  %v3238_v48 = vand.u32 4294901760, %v242_v41  ;;  %v385_v50 = vand.u32 4294901760, %v384_v39  ;;  %v4577_v51 = vand.u32 4294901760, %v3220_v40  ;;  %v3243_v52 = vsub.f32 %v246_v26, %v3211_v34 }
  0x40   : > { %487 = vmatpush.msra.mxu2 %v3176_v19  ;;  %554 = vmatpush.msra.mxu3 %v3158_v10  ;;  %v402_v53 = vsub.f32 %v3196_v29, %v4578_v42  ;;  %v4575_v54 = vand.u32 4294901760, %v3225_v43  ;;  %v391_v57 = vand.u32 4294901760, %v390_v45  ;;  %v3253_v58 = vand.u32 4294901760, %v240_v49  ;;  %v294_v45 = vld [vmem:[#allocation5 + $0x1e0] sm:$0xff]  ;;  %v288_v42 = vld [vmem:[#allocation5 + $0x1b0] sm:$0xff]  ;;  %p2960_p10 = pnand %p2959_p2, %p2955_p8 }
  0x41   : > { %309 = vmatpush.msra.mxu0 %v3160_v11  ;;  %374 = vmatpush.msra.mxu1 %v373_v38  ;;  %v3256_v59 = vsub.f32 %v244_v36, %v3231_v46  ;;  %v397_v60 = vand.u32 4294901760, %v396_v47  ;;  %v3261_v61 = vsub.f32 %v242_v41, %v3238_v48  ;;  %v408_v63 = vsub.f32 %v3220_v40, %v4577_v51 }
  0x42   : > { %490 = vmatpush.msra.mxu2 %v3179_v20  ;;  %556 = vmatpush.msra.mxu3 %v3160_v11  ;;  %v3267_v0 = vand.u32 4294901760, %v238_v55  ;;  %v4574_v1 = vand.u32 4294901760, %v3243_v52  ;;  %v3270_v2 = vand.u32 4294901760, %v226_v56  ;;  %v403_v7 = vand.u32 4294901760, %v402_v53 }
  0x43   : > { %311 = vmatpush.msra.mxu0 %v3173_v17  ;;  %380 = vmatpush.msra.mxu1 %v379_v44  ;;  %v414_v8 = vsub.f32 %v3225_v43, %v4575_v54  ;;  %v3278_v13 = vand.u32 4294901760, %v236_v62  ;;  %v4573_v18 = vand.u32 4294901760, %v3256_v59  ;;  %v3282_v26 = vsub.f32 %v240_v49, %v3253_v58 }
  0x44   : > { %493 = vmatpush.msra.mxu2 %v3182_v21  ;;  %558 = vmatpush.msra.mxu3 %v3173_v17  ;;  %v3285_v30 = vsub.f32 %v226_v56, %v3270_v2  ;;  %v4572_v32 = vand.u32 4294901760, %v3261_v61  ;;  %v3291_v36 = vand.u32 4294901760, %v296_v6  ;;  %v409_v37 = vand.u32 4294901760, %v408_v63 }
  0x45   : > { %313 = vmatpush.msra.mxu0 %v3189_v25  ;;  %386 = vmatpush.msra.mxu1 %v385_v50  ;;  %4648 = vst [vmem:[#allocation12_spill] sm:$0xff] %v3278_v13  ;;  %v420_v38 = vsub.f32 %v3243_v52, %v4574_v1  ;;  %v3297_v39 = vand.u32 4294901760, %v234_v12  ;;  %v3300_v41 = vsub.f32 %v238_v55, %v3267_v0  ;;  %v3307_v47 = vand.u32 4294901760, %v228_v31 }
  0x46   : > { %496 = vmatpush.msra.mxu2 %v3196_v29  ;;  %560 = vmatpush.msra.mxu3 %v3189_v25  ;;  %4649 = vst [vmem:[#allocation13_spill] sm:$0xff] %v3285_v30  ;;  %v3305_v44 = vand.u32 4294901760, %v3285_v30  ;;  %v415_v49 = vand.u32 4294901760, %v414_v8  ;;  %v426_v50 = vsub.f32 %v3256_v59, %v4573_v18  ;;  %v4576_v53 = vand.u32 4294901760, %v3282_v26  ;;  %v290_v18 = vld [vmem:[#allocation5 + $0x1c0] sm:$0xff] }
  0x47   : > { %315 = vmatpush.msra.mxu0 %v3193_v28  ;;  %392 = vmatpush.msra.mxu1 %v391_v57  ;;  %4650 = vst [vmem:[#allocation14_spill] sm:$0xff] %v3297_v39  ;;  %v3315_v55 = vsub.f32 %v236_v62, %v3278_v13  ;;  %v432_v56 = vsub.f32 %v3261_v61, %v4572_v32  ;;  %v421_v63 = vand.u32 4294901760, %v420_v38  ;;  %v3330_v8 = vand.u32 4294901760, %v294_v45 }
  0x48   : > { %499 = vmatpush.msra.mxu2 %v3220_v40  ;;  %562 = vmatpush.msra.mxu3 %v3193_v28  ;;  %4651 = vst [vmem:[#allocation15_spill] sm:$0xff] %v3305_v44  ;;  %v3323_v57 = vsub.f32 %v296_v6, %v3291_v36  ;;  %v3328_v62 = vsub.f32 %v234_v12, %v3297_v39  ;;  %v3357_v51 = vand.u32 4294901760, %v290_v18  ;;  %v3379_v27 = vand.u32 4294901760, %v288_v42 }
  0x49   : > { %317 = vmatpush.msra.mxu0 %v3211_v34  ;;  %398 = vmatpush.msra.mxu1 %v397_v60  ;;  %v292_v60 = vld [vmem:[#allocation5 + $0x1d0] sm:$0xff]  ;;  %4652 = vst [vmem:[#allocation16_spill] sm:$0xff] %v3330_v8  ;;  %v333_v6 = vsub.f32 %v3285_v30, %v3305_v44  ;;  %v3337_v32 = vsub.f32 %v228_v31, %v3307_v47  ;;  %v4584_v38 = vand.u32 4294901760, %v3315_v55  ;;  %v433_v54 = vand.u32 4294901760, %v432_v56  ;;  %v230_v56 = vld [vmem:[%s3140_s7 + $0x20] sm:$0xff] }
  0x4a   : > { %502 = vmatpush.msra.mxu2 %v3225_v43  ;;  %564 = vmatpush.msra.mxu3 %v3211_v34  ;;  %v438_v12 = vsub.f32 %v3282_v26, %v4576_v53  ;;  %v3344_v1 = vand.u32 4294901760, %v292_v60  ;;  %v4586_v31 = vand.u32 4294901760, %v3323_v57  ;;  %v3355_v53 = vsub.f32 %v294_v45, %v3330_v8 }
  0x4b   : > { %319 = vmatpush.msra.mxu0 %v3231_v46  ;;  %404 = vmatpush.msra.mxu1 %v403_v7  ;;  %v4580_v7 = vand.u32 4294901760, %v3300_v41  ;;  %4653 = vst [vmem:[#allocation17_spill] sm:$0xff] %v3337_v32  ;;  %v3361_v35 = vand.u32 4294901760, %v333_v6  ;;  %v450_v45 = vsub.f32 %v3315_v55, %v4584_v38  ;;  %v3389_v23 = vsub.f32 %v290_v18, %v3357_v51 }
  0x4c   : > { %505 = vmatpush.msra.mxu2 %v3243_v52  ;;  %566 = vmatpush.msra.mxu3 %v3231_v46  ;;  %v3372_v33 = vsub.f32 %v292_v60, %v3344_v1  ;;  %v800_v6 = vsub.f32 %v3323_v57, %v4586_v31  ;;  %v3403_v38 = vsub.f32 %v288_v42, %v3379_v27 }
  0x4d   : > { %321 = vmatpush.msra.mxu0 %v3238_v48  ;;  %410 = vmatpush.msra.mxu1 %v409_v37  ;;  %v427_v37 = vand.u32 4294901760, %v426_v50  ;;  %v4588_v50 = vand.u32 4294901760, %v3328_v62  ;;  %4654 = vst [vmem:[#allocation18_spill] sm:$0xff] %v3361_v35 }
  0x4e   : > { %508 = vmatpush.msra.mxu2 %v3256_v59  ;;  %568 = vmatpush.msra.mxu3 %v3238_v48  ;;  %v801_v18 = vand.u32 4294901760, %v800_v6  ;;  %v3414_v6 = vand.u32 4294901760, %v284_v22 }
  0x4f   : > { %323 = vmatpush.msra.mxu0 %v3253_v58  ;;  %416 = vmatpush.msra.mxu1 %v415_v49  ;;  %v444_v49 = vsub.f32 %v3300_v41, %v4580_v7  ;;  %v439_v7 = vand.u32 4294901760, %v438_v12  ;;  %v456_v60 = vsub.f32 %v3328_v62, %v4588_v50 }
  0x50   : > { %511 = vmatpush.msra.mxu2 %v3261_v61  ;;  %570 = vmatpush.msra.mxu3 %v3253_v58 }
  0x51   : > { %325 = vmatpush.msra.mxu0 %v3267_v0  ;;  %422 = vmatpush.msra.mxu1 %v421_v63  ;;  %v3365_v63 = vand.u32 4294901760, %v3337_v32  ;;  %v445_v12 = vand.u32 4294901760, %v444_v49  ;;  %v451_v49 = vand.u32 4294901760, %v450_v45  ;;  %v457_v45 = vand.u32 4294901760, %v456_v60 }
  0x52   : > { %514 = vmatpush.msra.mxu2 %v3282_v26  ;;  %572 = vmatpush.msra.mxu3 %v3267_v0 }
  0x53   : > { %4655 = vst [vmem:[#allocation19_spill] sm:$0xff] %v3365_v63  ;;  %327 = vmatpush.msra.mxu0 %v3278_v13  ;;  %428 = vmatpush.msra.mxu1 %v427_v37  ;;  %v3381_v37 = vand.u32 4294901760, %v230_v56  ;;  %v341_v31 = vsub.f32 %v3337_v32, %v3365_v63 }
  0x54   : > { %517 = vmatpush.msra.mxu2 %v3300_v41  ;;  %574 = vmatpush.msra.mxu3 %v3278_v13  ;;  %v3398_v13 = vand.u32 4294901760, %v286_v24 }
  0x55   : > { %329 = vmatpush.msra.mxu0 %v3297_v39  ;;  %434 = vmatpush.msra.mxu1 %v433_v54  ;;  %v4656_v54 = vand.u32 4294901760, %v3164_v14  ;;  %v4658_v14 = vand.u32 4294901760, %v3167_v15  ;;  %v3418_v42 = vand.u32 4294901760, %v341_v31  ;;  %v4662_v15 = vand.u32 4294901760, %v3372_v33  ;;  %v278_v31 = vld [vmem:[#allocation5 + $0x160] sm:$0xff] }
  0x56   : > { %335 = vmatmul.f32.vlgmr.msra.gmra.mxu0 %v3361_v35  ;;  %520 = vmatpush.msra.mxu2 %v3315_v55  ;;  %v3406_v35 = vsub.f32 %v230_v56, %v3381_v37  ;;  %v4661_v56 = vand.u32 4294901760, %v3171_v16  ;;  %v3426_v60 = vsub.f32 %v286_v24, %v3398_v13  ;;  %v4663_v16 = vand.u32 4294901760, %v3176_v19 }
  0x57   : > { %440 = vmatpush.msra.mxu1 %v439_v7  ;;  %605 = vmatpush.msrb.mxu0 %v4656_v54  ;;  %v282_v7 = vld [vmem:[#allocation5 + $0x180] sm:$0xff]  ;;  %v4659_v54 = vand.u32 4294901760, %v3355_v53  ;;  %4660 = vst [vmem:[#allocation21_spill] sm:$0xff] %v3418_v42  ;;  %v4664_v24 = vand.u32 4294901760, %v3389_v23  ;;  %v4665_v19 = vand.u32 4294901760, %v3179_v20  ;;  %v4667_v20 = vand.u32 4294901760, %v3182_v21 }
  0x58   : > { %523 = vmatpush.msra.mxu2 %v3328_v62  ;;  %576 = vmatpush.msra.mxu3 %v3297_v39  ;;  %4657 = vst [vmem:[#allocation20_spill] sm:$0xff] %v3406_v35  ;;  %v232_v39 = vld [vmem:[%s3140_s7 + $0x30] sm:$0xff]  ;;  %v4668_v21 = vand.u32 4294901760, %v3426_v60 }
  0x59   : > { %446 = vmatpush.msra.mxu1 %v445_v12  ;;  %609 = vmatpush.msrb.mxu0 %v4658_v14  ;;  %v806_v50 = vsub.f32 %v3355_v53, %v4659_v54  ;;  %v812_v12 = vsub.f32 %v3372_v33, %v4662_v15  ;;  %v3428_v14 = vand.u32 4294901760, %v282_v7  ;;  %v280_v54 = vld [vmem:[#allocation5 + $0x170] sm:$0xff]  ;;  %v818_v15 = vsub.f32 %v3389_v23, %v4664_v24 }
  0x5a   : > { %526 = vmatmul.f32.vlgmr.msra.gmra.mxu2 %v3285_v30  ;;  %580 = vmatmul.f32.vlgmr.msra.gmra.mxu3 %v3305_v44  ;;  %v3442_v44 = vsub.f32 %v284_v22, %v3414_v6  ;;  %v3448_v30 = vand.u32 4294901760, %v232_v39 }
  0x5b   : > { %452 = vmatpush.msra.mxu1 %v451_v49  ;;  %613 = vmatpush.msrb.mxu0 %v4661_v56  ;;  %v3434_v49 = vand.u32 4294901760, %v3406_v35  ;;  %v807_v56 = vand.u32 4294901760, %v806_v50  ;;  %v813_v50 = vand.u32 4294901760, %v812_v12  ;;  %v3455_v22 = vsub.f32 %v282_v7, %v3428_v14 }
  0x5c   : > { %733 = vmatpush.msrb.mxu2 %v3291_v36  ;;  %802 = vmatpush.msrb.mxu3 %v801_v18  ;;  %v3446_v18 = vand.u32 4294901760, %v280_v54  ;;  %v819_v12 = vand.u32 4294901760, %v818_v15  ;;  %v4598_v7 = vand.u32 4294901760, %v3442_v44 }
  0x5d   : > { %458 = vmatpush.msra.mxu1 %v457_v45  ;;  %617 = vmatpush.msrb.mxu0 %v4663_v16  ;;  %v4666_v16 = vand.u32 4294901760, %v3403_v38  ;;  %v274_v45 = vld [vmem:[#allocation5 + $0x140] sm:$0xff] }
  0x5e   : > { %735 = vmatpush.msrb.mxu2 %v3330_v8  ;;  %343 = vmatmul.f32.gmra.mxu0 %v3418_v42  ;;  %v349_v42 = vsub.f32 %v3406_v35, %v3434_v49  ;;  %v276_v8 = vld [vmem:[#allocation5 + $0x150] sm:$0xff]  ;;  %v3496_v15 = vand.u32 4294901760, %v274_v45 }
  0x5f   : > { %460 = vmatmul.f32.vlgmr.msra.gmra.mxu1 %v3270_v2  ;;  %621 = vmatpush.msrb.mxu0 %v4665_v19  ;;  %v824_v24 = vsub.f32 %v3403_v38, %v4666_v16  ;;  %v3467_v19 = vand.u32 4294901760, %v278_v31  ;;  %v3475_v16 = vsub.f32 %v232_v39, %v3448_v30 }
  0x60   : > { %684 = vmatpush.msrb.mxu1 %v3150_v3  ;;  %737 = vmatpush.msrb.mxu2 %v3344_v1  ;;  %v3472_v3 = vsub.f32 %v280_v54, %v3446_v18  ;;  %v3487_v39 = vand.u32 4294901760, %v349_v42 }
  0x61   : > { %808 = vmatpush.msrb.mxu3 %v807_v56  ;;  %625 = vmatpush.msrb.mxu0 %v4667_v20  ;;  %v830_v56 = vsub.f32 %v3426_v60, %v4668_v21  ;;  %v3482_v20 = vand.u32 4294901760, %v276_v8  ;;  %v825_v54 = vand.u32 4294901760, %v824_v24  ;;  %v3494_v21 = vsub.f32 %v278_v31, %v3467_v19 }
  0x62   : > { %686 = vmatpush.msrb.mxu1 %v3152_v4  ;;  %739 = vmatpush.msrb.mxu2 %v3357_v51  ;;  %v4669_v4 = vand.u32 4294901760, %v3196_v29  ;;  %4670 = vst [vmem:[#allocation22_spill] sm:$0xff] %v3487_v39  ;;  %v4600_v29 = vand.u32 4294901760, %v3472_v3  ;;  %v3503_v42 = vand.u32 4294901760, %v3475_v16  ;;  %v4672_v31 = vand.u32 4294901760, %v3455_v22 }
  0x63   : > { %814 = vmatpush.msrb.mxu3 %v813_v50  ;;  %531 = vmatmul.f32.gmra.mxu2 %v3337_v32  ;;  %v836_v50 = vsub.f32 %v3442_v44, %v4598_v7  ;;  %v272_v32 = vld [vmem:[#allocation5 + $0x130] sm:$0xff]  ;;  %v831_v24 = vand.u32 4294901760, %v830_v56 }
  0x64   : > { %629 = vmatpush.msrb.mxu0 %v4669_v4  ;;  %688 = vmatpush.msrb.mxu1 %v3154_v5  ;;  %v4671_v5 = vand.u32 4294901760, %v3220_v40  ;;  %v3511_v4 = vsub.f32 %v276_v8, %v3482_v20  ;;  %v270_v40 = vld [vmem:[#allocation5 + $0x120] sm:$0xff]  ;;  %v268_v8 = vld [vmem:[#allocation5 + $0x110] sm:$0xff] }
  0x65   : > { %741 = vmatpush.msrb.mxu2 %v3379_v27  ;;  %820 = vmatpush.msrb.mxu3 %v819_v12  ;;  %v842_v12 = vsub.f32 %v3455_v22, %v4672_v31  ;;  %v837_v56 = vand.u32 4294901760, %v836_v50  ;;  %v3521_v31 = vsub.f32 %v274_v45, %v3496_v15  ;;  %v227_v50 = vld [vmem:[%s3140_s7 + $0x8] sm:$0xff] }
  0x66   : > { %586 = vmatmul.f32.gmra.mxu3 %v3365_v63  ;;  %633 = vmatpush.msrb.mxu0 %v4671_v5  ;;  %v3514_v5 = vand.u32 4294901760, %v272_v32  ;;  %v3541_v63 = vand.u32 4294901760, %v268_v8 }
  0x67   : > { %690 = vmatpush.msrb.mxu1 %v3156_v9  ;;  %743 = vmatpush.msrb.mxu2 %v3398_v13  ;;  %v4673_v9 = vand.u32 4294901760, %v3225_v43  ;;  %v3530_v43 = vand.u32 4294901760, %v270_v40  ;;  %v843_v45 = vand.u32 4294901760, %v842_v12 }
  0x68   : > { %826 = vmatpush.msrb.mxu3 %v825_v54  ;;  %351 = vmatmul.f32.gmra.mxu0 %v3487_v39  ;;  %v848_v54 = vsub.f32 %v3472_v3, %v4600_v29  ;;  %v357_v39 = vsub.f32 %v3475_v16, %v3503_v42  ;;  %v3539_v29 = vsub.f32 %v272_v32, %v3514_v5 }
  0x69   : > { %464 = vmatmul.f32.gmra.mxu1 %v3307_v47  ;;  %637 = vmatpush.msrb.mxu0 %v4673_v9  ;;  %v4674_v9 = vand.u32 4294901760, %v3243_v52 }
  0x6a   : > { %692 = vmatpush.msrb.mxu1 %v3158_v10  ;;  %745 = vmatpush.msrb.mxu2 %v3414_v6  ;;  %v266_v10 = vld [vmem:[#allocation5 + $0x100] sm:$0xff]  ;;  %v849_v32 = vand.u32 4294901760, %v848_v54  ;;  %v3553_v7 = vand.u32 4294901760, %v357_v39  ;;  %v3569_v39 = vsub.f32 %v268_v8, %v3541_v63  ;;  %v4680_v54 = vand.u32 4294901760, %v3521_v31 }
  0x6b   : > { %832 = vmatpush.msrb.mxu3 %v831_v24  ;;  %641 = vmatpush.msrb.mxu0 %v4674_v9  ;;  %v4675_v24 = vand.u32 4294901760, %v3494_v21  ;;  %v3548_v9 = vand.u32 4294901760, %v227_v50 }
  0x6c   : > { %694 = vmatpush.msrb.mxu1 %v3160_v11  ;;  %747 = vmatpush.msrb.mxu2 %v3428_v14  ;;  %v4677_v11 = vand.u32 4294901760, %v3256_v59  ;;  %v4679_v59 = vand.u32 4294901760, %v3261_v61 }
  0x6d   : > { %838 = vmatpush.msrb.mxu3 %v837_v56  ;;  %536 = vmatmul.f32.gmra.mxu2 %v3406_v35  ;;  %v854_v52 = vsub.f32 %v3494_v21, %v4675_v24  ;;  %4676 = vst [vmem:[#allocation23_spill] sm:$0xff] %v3548_v9  ;;  %v3556_v56 = vsub.f32 %v270_v40, %v3530_v43  ;;  %v3558_v35 = vand.u32 4294901760, %v266_v10  ;;  %v4678_v24 = vand.u32 4294901760, %v3511_v4 }
  0x6e   : > { %645 = vmatpush.msrb.mxu0 %v4677_v11  ;;  %696 = vmatpush.msrb.mxu1 %v3173_v17  ;;  %v871_v17 = vand.u32 4294901760, %v3539_v29  ;;  %v3577_v11 = vsub.f32 %v227_v50, %v3548_v9 }
  0x6f   : > { %749 = vmatpush.msrb.mxu2 %v3446_v18  ;;  %844 = vmatpush.msrb.mxu3 %v843_v45  ;;  %v860_v12 = vsub.f32 %v3511_v4, %v4678_v24  ;;  %v855_v40 = vand.u32 4294901760, %v854_v52  ;;  %v866_v45 = vsub.f32 %v3521_v31, %v4680_v54  ;;  %v877_v61 = vand.u32 4294901760, %v3556_v56  ;;  %v229_v24 = vld [vmem:[%s3140_s7 + $0x18] sm:$0xff] }
  0x70   : > { %592 = vmatmul.f32.gmra.mxu3 %v3434_v49  ;;  %649 = vmatpush.msrb.mxu0 %v4679_v59  ;;  %4681 = vst [vmem:[#allocation24_spill] sm:$0xff] %v3577_v11  ;;  %v3582_v8 = vsub.f32 %v266_v10, %v3558_v35  ;;  %v872_v50 = vsub.f32 %v3539_v29, %v871_v17  ;;  %v4683_v10 = vand.u32 4294901760, %v3300_v41  ;;  %v4686_v41 = vand.u32 4294901760, %v3315_v55 }
  0x71   : > { %698 = vmatpush.msrb.mxu1 %v3189_v25  ;;  %751 = vmatpush.msrb.mxu2 %v3467_v19  ;;  %v4682_v25 = vand.u32 4294901760, %v3282_v26  ;;  %v861_v52 = vand.u32 4294901760, %v860_v12  ;;  %v867_v59 = vand.u32 4294901760, %v866_v45  ;;  %v3597_v26 = vand.u32 4294901760, %v3577_v11 }
  0x72   : > { %850 = vmatpush.msrb.mxu3 %v849_v32  ;;  %359 = vmatmul.f32.gmra.mxu0 %v3553_v7  ;;  %v883_v32 = vand.u32 4294901760, %v3569_v39  ;;  %v889_v12 = vand.u32 4294901760, %v3582_v8  ;;  %v873_v54 = vand.u32 4294901760, %v872_v50 }
  0x73   : > { %468 = vmatmul.f32.gmra.mxu1 %v3381_v37  ;;  %653 = vmatpush.msrb.mxu0 %v4682_v25  ;;  %4684 = vst [vmem:[#allocation25_spill] sm:$0xff] %v3597_v26  ;;  %v767_v45 = vsub.f32 %v3577_v11, %v3597_v26  ;;  %v4687_v25 = vand.u32 4294901760, %v3328_v62 }
  0x74   : > { %700 = vmatpush.msrb.mxu1 %v3193_v28  ;;  %753 = vmatpush.msrb.mxu2 %v3482_v20  ;;  %v878_v28 = vsub.f32 %v3556_v56, %v877_v61 }
  0x75   : > { %856 = vmatpush.msrb.mxu3 %v855_v40  ;;  %657 = vmatpush.msrb.mxu0 %v4683_v10  ;;  %v3606_v40 = vand.u32 4294901760, %v229_v24  ;;  %v3631_v62 = vand.u32 4294901760, %v767_v45  ;;  %v4698_v45 = vand.u32 4294901760, %v3372_v33 }
  0x76   : > { %702 = vmatpush.msrb.mxu1 %v3211_v34  ;;  %755 = vmatpush.msrb.mxu2 %v3496_v15  ;;  %v884_v34 = vsub.f32 %v3569_v39, %v883_v32  ;;  %v879_v55 = vand.u32 4294901760, %v878_v28 }
  0x77   : > { %862 = vmatpush.msrb.mxu3 %v861_v52  ;;  %541 = vmatmul.f32.gmra.mxu2 %v3475_v16  ;;  %4685 = vst [vmem:[#allocation26_spill] sm:$0xff] %v3606_v40  ;;  %v3626_v52 = vsub.f32 %v229_v24, %v3606_v40 }
  0x78   : > { %661 = vmatpush.msrb.mxu0 %v4686_v41  ;;  %704 = vmatpush.msrb.mxu1 %v3231_v46  ;;  %v890_v46 = vsub.f32 %v3582_v8, %v889_v12  ;;  %v885_v50 = vand.u32 4294901760, %v884_v34  ;;  %4689 = vst [vmem:[#allocation28_spill] sm:$0xff] %v3631_v62  ;;  %v4694_v41 = vld [vmem:[#allocation14_spill] sm:$0xff] }
  0x79   : > { %757 = vmatpush.msrb.mxu2 %v3514_v5  ;;  %868 = vmatpush.msrb.mxu3 %v867_v59  ;;  %4688 = vst [vmem:[#allocation27_spill] sm:$0xff] %v3626_v52  ;;  %v3638_v24 = vand.u32 4294901760, %v3626_v52  ;;  %v4692_v59 = vld [vmem:[#allocation12_spill] sm:$0xff] }
  0x7a   : > { %598 = vmatmul.f32.gmra.mxu3 %v3503_v42  ;;  %665 = vmatpush.msrb.mxu0 %v4687_v25  ;;  %v891_v10 = vand.u32 4294901760, %v890_v46  ;;  %v4699_v25 = vld [vmem:[#allocation16_spill] sm:$0xff]  ;;  %v4701_v46 = vand.u32 4294901760, %v3389_v23 }
  0x7b   : > { %706 = vmatpush.msrb.mxu1 %v3238_v48  ;;  %759 = vmatpush.msrb.mxu2 %v3530_v43  ;;  %v231_v48 = vld [vmem:[%s3140_s7 + $0x28] sm:$0xff]  ;;  %4690 = vst [vmem:[#allocation29_spill] sm:$0xff] %v3638_v24  ;;  %v775_v28 = vsub.f32 %v3626_v52, %v3638_v24 }
  0x7c   : > { %874 = vmatpush.msrb.mxu3 %v873_v54  ;;  %472 = vmatmul.f32.gmra.mxu1 %v3448_v30  ;;  %v4695_v54 = vand.u32 4294901760, %v3355_v53 }
  0x7d   : > { %667 = vmatmul.f32.vlgmr.msrb.gmra.mxu0 %v3270_v2  ;;  %708 = vmatpush.msrb.mxu1 %v3253_v58  ;;  %v3643_v58 = vand.u32 4294901760, %v231_v48 }
  0x7e   : > { %761 = vmatpush.msrb.mxu2 %v3541_v63  ;;  %880 = vmatpush.msrb.mxu3 %v879_v55 }
  0x7f   : > { %912 = vmatpush.msra.mxu0 %v3323_v57  ;;  %710 = vmatpush.msrb.mxu1 %v3267_v0  ;;  %4691 = vst [vmem:[#allocation30_spill] sm:$0xff] %v3643_v58  ;;  %v4693_v0 = vand.u32 4294901760, %v3323_v57  ;;  %v3657_v34 = vsub.f32 %v231_v48, %v3643_v58  ;;  %v3663_v57 = vand.u32 4294901760, %v775_v28  ;;  %v4713_v48 = vand.u32 4294901760, %v3511_v4  ;;  %v259_v28 = vld [vmem:[#allocation5 + $0xc8] sm:$0xff] }
  0x80   : > { %763 = vmatpush.msrb.mxu2 %v3558_v35  ;;  %886 = vmatpush.msrb.mxu3 %v885_v50 }
  0x81   : > { %915 = vmatpush.msra.mxu0 %v3355_v53  ;;  %769 = vmatmul.f32.vlgmr.msrb.gmra.mxu2 %v3631_v62  ;;  %4696 = vst [vmem:[#allocation12_spill] sm:$0xff] %v3657_v34  ;;  %v233_v53 = vld [vmem:[%s3140_s7 + $0x38] sm:$0xff]  ;;  %v3672_v55 = vand.u32 4294901760, %v3657_v34  ;;  %v4725_v62 = vld [vmem:[#allocation13_spill] sm:$0xff] }
  0x82   : > { %712 = vmatpush.msrb.mxu1 %v4692_v59  ;;  %892 = vmatpush.msrb.mxu3 %v891_v10  ;;  %4697 = vst [vmem:[#allocation14_spill] sm:$0xff] %v3663_v57  ;;  %v4714_v59 = vand.u32 4294901760, %v3521_v31 }
  0x83   : > { %918 = vmatpush.msra.mxu0 %v3372_v33  ;;  %1039 = vmatpush.msra.mxu2 %v4693_v0  ;;  %4700 = vst [vmem:[#allocation16_spill] sm:$0xff] %v3672_v55  ;;  %v4703_v33 = vand.u32 4294901760, %v3403_v38  ;;  %v783_v50 = vsub.f32 %v3657_v34, %v3672_v55 }
  0x84   : > { %894 = vmatmul.f32.vlgmr.msrb.gmra.mxu3 %v3548_v9  ;;  %714 = vmatpush.msrb.mxu1 %v4694_v41 }
  0x85   : > { %921 = vmatpush.msra.mxu0 %v3389_v23  ;;  %1043 = vmatpush.msra.mxu2 %v4695_v54  ;;  %v4704_v23 = vand.u32 4294901760, %v3426_v60  ;;  %v253_v54 = vld [vmem:[#allocation5 + $0x98] sm:$0xff] }
  0x86   : > { %1118 = vmatpush.msra.mxu3 %v3291_v36  ;;  %671 = vmatmul.f32.gmra.mxu0 %v3307_v47 }
  0x87   : > { %716 = vmatmul.f32.vlgmr.msrb.gmra.mxu1 %v3270_v2  ;;  %924 = vmatpush.msra.mxu0 %v3403_v38 }
  0x88   : > { %980 = vmatpush.msra.mxu1 %v3291_v36  ;;  %1047 = vmatpush.msra.mxu2 %v4698_v45  ;;  %v3679_v36 = vand.u32 4294901760, %v233_v53  ;;  %v251_v45 = vld [vmem:[#allocation5 + $0x88] sm:$0xff] }
  0x89   : > { %1120 = vmatpush.msra.mxu3 %v4699_v25  ;;  %927 = vmatpush.msra.mxu0 %v3426_v60  ;;  %v4709_v60 = vand.u32 4294901760, %v3455_v22 }
  0x8a   : > { %982 = vmatpush.msra.mxu1 %v4699_v25  ;;  %1051 = vmatpush.msra.mxu2 %v4701_v46  ;;  %4702 = vst [vmem:[#allocation31_spill] sm:$0xff] %v3679_v36  ;;  %v3694_v10 = vsub.f32 %v233_v53, %v3679_v36 }
  0x8b   : > { %1122 = vmatpush.msra.mxu3 %v3344_v1  ;;  %777 = vmatmul.f32.gmra.mxu2 %v3663_v57  ;;  %v4722_v57 = vld [vmem:[#allocation18_spill] sm:$0xff] }
  0x8c   : > { %930 = vmatpush.msra.mxu0 %v3442_v44  ;;  %984 = vmatpush.msra.mxu1 %v3344_v1  ;;  %4705 = vst [vmem:[#allocation32_spill] sm:$0xff] %v3694_v10  ;;  %v3700_v1 = vand.u32 4294901760, %v783_v50  ;;  %v3708_v38 = vand.u32 4294901760, %v3694_v10  ;;  %v249_v50 = vld [vmem:[#allocation5 + $0x78] sm:$0xff] }
  0x8d   : > { %1055 = vmatpush.msra.mxu2 %v4703_v33  ;;  %1124 = vmatpush.msra.mxu3 %v3357_v51  ;;  %v3820_v33 = vand.u32 4294901760, %v251_v45 }
  0x8e   : > { %898 = vmatmul.f32.gmra.mxu3 %v3606_v40  ;;  %933 = vmatpush.msra.mxu0 %v3455_v22  ;;  %4706 = vst [vmem:[#allocation33_spill] sm:$0xff] %v3700_v1  ;;  %v265_v22 = vld [vmem:[#allocation5 + $0xf8] sm:$0xff] }
  0x8f   : > { %986 = vmatpush.msra.mxu1 %v3357_v51  ;;  %1059 = vmatpush.msra.mxu2 %v4704_v23  ;;  %v4707_v51 = vand.u32 4294901760, %v3442_v44  ;;  %4708 = vst [vmem:[#allocation34_spill] sm:$0xff] %v3708_v38  ;;  %v791_v44 = vsub.f32 %v3694_v10, %v3708_v38 }
  0x90   : > { %1126 = vmatpush.msra.mxu3 %v3379_v27  ;;  %675 = vmatmul.f32.gmra.mxu0 %v3381_v37 }
  0x91   : > { %720 = vmatmul.f32.gmra.mxu1 %v3307_v47  ;;  %936 = vmatpush.msra.mxu0 %v3472_v3 }
  0x92   : > { %988 = vmatpush.msra.mxu1 %v3379_v27  ;;  %1063 = vmatpush.msra.mxu2 %v4707_v51  ;;  %v4710_v27 = vand.u32 4294901760, %v3472_v3  ;;  %v263_v3 = vld [vmem:[#allocation5 + $0xe8] sm:$0xff] }
  0x93   : > { %1128 = vmatpush.msra.mxu3 %v3398_v13  ;;  %939 = vmatpush.msra.mxu0 %v3494_v21  ;;  %v3743_v0 = vand.u32 4294901760, %v263_v3 }
  0x94   : > { %990 = vmatpush.msra.mxu1 %v3398_v13  ;;  %1067 = vmatpush.msra.mxu2 %v4709_v60  ;;  %v4711_v13 = vand.u32 4294901760, %v3494_v21  ;;  %v261_v21 = vld [vmem:[#allocation5 + $0xd8] sm:$0xff] }
  0x95   : > { %1130 = vmatpush.msra.mxu3 %v3414_v6  ;;  %785 = vmatmul.f32.gmra.mxu2 %v3700_v1 }
  0x96   : > { %942 = vmatpush.msra.mxu0 %v3511_v4  ;;  %992 = vmatpush.msra.mxu1 %v3414_v6  ;;  %v3731_v6 = vand.u32 4294901760, %v791_v44 }
  0x97   : > { %1071 = vmatpush.msra.mxu2 %v4710_v27  ;;  %1132 = vmatpush.msra.mxu3 %v3428_v14  ;;  %v247_v27 = vld [vmem:[#allocation5 + $0x68] sm:$0xff] }
  0x98   : > { %902 = vmatmul.f32.gmra.mxu3 %v3643_v58  ;;  %945 = vmatpush.msra.mxu0 %v3521_v31  ;;  %4712 = vst [vmem:[#allocation35_spill] sm:$0xff] %v3731_v6  ;;  %v257_v31 = vld [vmem:[#allocation5 + $0xb8] sm:$0xff] }
  0x99   : > { %994 = vmatpush.msra.mxu1 %v3428_v14  ;;  %1075 = vmatpush.msra.mxu2 %v4711_v13  ;;  %v3736_v14 = vand.u32 4294901760, %v265_v22  ;;  %v3834_v13 = vand.u32 4294901760, %v249_v50 }
  0x9a   : > { %1134 = vmatpush.msra.mxu3 %v3446_v18  ;;  %679 = vmatmul.f32.gmra.mxu0 %v3448_v30 }
  0x9b   : > { %724 = vmatmul.f32.gmra.mxu1 %v3381_v37  ;;  %948 = vmatpush.msra.mxu0 %v3539_v29  ;;  %v3752_v4 = vsub.f32 %v265_v22, %v3736_v14 }
  0x9c   : > { %996 = vmatpush.msra.mxu1 %v3446_v18  ;;  %1079 = vmatpush.msra.mxu2 %v4713_v48  ;;  %v3749_v18 = vand.u32 4294901760, %v261_v21  ;;  %v245_v48 = vld [vmem:[#allocation5 + $0x58] sm:$0xff] }
  0x9d   : > { %1136 = vmatpush.msra.mxu3 %v3467_v19  ;;  %951 = vmatpush.msra.mxu0 %v3556_v56  ;;  %v4610_v29 = vand.u32 4294901760, %v3752_v4  ;;  %v3778_v56 = vand.u32 4294901760, %v257_v31 }
  0x9e   : > { %998 = vmatpush.msra.mxu1 %v3467_v19  ;;  %1083 = vmatpush.msra.mxu2 %v4714_v59  ;;  %v3760_v19 = vsub.f32 %v263_v3, %v3743_v0  ;;  %v3840_v3 = vsub.f32 %v251_v45, %v3820_v33  ;;  %v3846_v59 = vand.u32 4294901760, %v247_v27 }
  0x9f   : > { %1138 = vmatpush.msra.mxu3 %v3482_v20  ;;  %793 = vmatmul.f32.gmra.mxu2 %v3731_v6 }
  0xa0   : > { %954 = vmatpush.msra.mxu0 %v3569_v39  ;;  %1000 = vmatpush.msra.mxu1 %v3482_v20  ;;  %v3765_v20 = vand.u32 4294901760, %v259_v28  ;;  %v4608_v45 = vand.u32 4294901760, %v3840_v3 }
  0xa1   : > { %1087 = vmatpush.msra.mxu2 %v871_v17  ;;  %1140 = vmatpush.msra.mxu3 %v3496_v15  ;;  %v3771_v17 = vsub.f32 %v261_v21, %v3749_v18 }
  0xa2   : > { %906 = vmatmul.f32.gmra.mxu3 %v3679_v36  ;;  %957 = vmatpush.msra.mxu0 %v3582_v8  ;;  %v3784_v41 = vsub.f32 %v259_v28, %v3765_v20  ;;  %v3802_v8 = vand.u32 4294901760, %v253_v54 }
  0xa3   : > { %1002 = vmatpush.msra.mxu1 %v3496_v15  ;;  %1091 = vmatpush.msra.mxu2 %v877_v61  ;;  %v255_v15 = vld [vmem:[#allocation5 + $0xa8] sm:$0xff]  ;;  %v4609_v61 = vand.u32 4294901760, %v3760_v19 }
  0xa4   : > { %1142 = vmatpush.msra.mxu3 %v3514_v5  ;;  %728 = vmatmul.f32.gmra.mxu1 %v3448_v30  ;;  %v3792_v39 = vand.u32 4294901760, %v255_v15  ;;  %v4606_v53 = vand.u32 4294901760, %v3784_v41  ;;  %v3826_v51 = vsub.f32 %v253_v54, %v3802_v8  ;;  %v3855_v54 = vand.u32 4294901760, %v245_v48 }
  0xa5   : > { %960 = vmatmul.f32.vlgmr.msra.gmra.mxu0 %v3577_v11  ;;  %1004 = vmatpush.msra.mxu1 %v3514_v5  ;;  %v1234_v5 = vsub.f32 %v3752_v4, %v4610_v29 }
  0xa6   : > { %1095 = vmatpush.msra.mxu2 %v883_v32  ;;  %1144 = vmatpush.msra.mxu3 %v3530_v43  ;;  %v4607_v32 = vand.u32 4294901760, %v3771_v17  ;;  %v3816_v46 = vsub.f32 %v255_v15, %v3792_v39  ;;  %v1252_v60 = vsub.f32 %v3784_v41, %v4606_v53  ;;  %v4604_v28 = vand.u32 4294901760, %v3826_v51 }
  0xa7   : > { %1167 = vmatpush.msrb.mxu0 %v3736_v14  ;;  %1006 = vmatpush.msra.mxu1 %v3530_v43  ;;  %v1240_v43 = vsub.f32 %v3760_v19, %v4609_v61 }
  0xa8   : > { %1099 = vmatpush.msra.mxu2 %v889_v12  ;;  %1146 = vmatpush.msra.mxu3 %v3541_v63  ;;  %v3805_v12 = vsub.f32 %v257_v31, %v3778_v56  ;;  %v1246_v25 = vsub.f32 %v3771_v17, %v4607_v32  ;;  %v4603_v22 = vand.u32 4294901760, %v3816_v46  ;;  %v1253_v31 = vand.u32 4294901760, %v1252_v60  ;;  %v237_v32 = vld [vmem:[#allocation5 + $0x18] sm:$0xff] }
  0xa9   : > { %1169 = vmatpush.msrb.mxu0 %v3743_v0  ;;  %1101 = vmatmul.f32.vlgmr.msra.gmra.mxu2 %v3548_v9  ;;  %v3910_v29 = vand.u32 4294901760, %v237_v32 }
  0xaa   : > { %1008 = vmatpush.msra.mxu1 %v3541_v63  ;;  %1148 = vmatpush.msra.mxu3 %v3558_v35  ;;  %v1235_v63 = vand.u32 4294901760, %v1234_v5  ;;  %v4605_v23 = vand.u32 4294901760, %v3805_v12  ;;  %v1247_v44 = vand.u32 4294901760, %v1246_v25  ;;  %v1264_v15 = vsub.f32 %v3816_v46, %v4603_v22 }
  0xab   : > { %1171 = vmatpush.msrb.mxu0 %v3749_v18  ;;  %1346 = vmatpush.msrb.mxu2 %v3752_v4  ;;  %v3858_v5 = vsub.f32 %v249_v50, %v3834_v13  ;;  %v1270_v25 = vsub.f32 %v3826_v51, %v4604_v28  ;;  %v241_v50 = vld [vmem:[#allocation5 + $0x38] sm:$0xff]  ;;  %v3878_v22 = vsub.f32 %v245_v48, %v3855_v54  ;;  %v239_v28 = vld [vmem:[#allocation5 + $0x28] sm:$0xff] }
  0xac   : > { %1150 = vmatmul.f32.vlgmr.msra.gmra.mxu3 %v3548_v9  ;;  %1010 = vmatpush.msra.mxu1 %v3558_v35  ;;  %v1241_v35 = vand.u32 4294901760, %v1240_v43  ;;  %v1258_v21 = vsub.f32 %v3805_v12, %v4605_v23  ;;  %v243_v43 = vld [vmem:[#allocation5 + $0x48] sm:$0xff]  ;;  %v3891_v48 = vand.u32 4294901760, %v239_v28  ;;  %4715 = vst [vmem:[#allocation36_spill] sm:$0xff] %v3910_v29  ;;  %v4723_v9 = vand.u32 4294901760, %v3752_v4 }
  0xad   : > { %1173 = vmatpush.msrb.mxu0 %v3765_v20  ;;  %1349 = vmatpush.msrb.mxu2 %v3760_v19  ;;  %v3872_v60 = vand.u32 4294901760, %v243_v43 }
  0xae   : > { %1414 = vmatpush.msrb.mxu3 %v3736_v14  ;;  %965 = vmatmul.f32.gmra.mxu0 %v3626_v52  ;;  %v295_v52 = vld [vmem:[#allocation5 + $0x1e8] sm:$0xff] }
  0xaf   : > { %1014 = vmatmul.f32.vlgmr.msra.gmra.mxu1 %v3597_v26  ;;  %1175 = vmatpush.msrb.mxu0 %v3778_v56  ;;  %v3894_v53 = vsub.f32 %v243_v43, %v3872_v60  ;;  %v235_v43 = vld [vmem:[#allocation5 + $0x8] sm:$0xff]  ;;  %v3949_v11 = vand.u32 4294901760, %v295_v52 }
  0xb0   : > { %1236 = vmatpush.msrb.mxu1 %v1235_v63  ;;  %1352 = vmatpush.msrb.mxu2 %v3771_v17  ;;  %v1259_v63 = vand.u32 4294901760, %v1258_v21  ;;  %v4611_v21 = vand.u32 4294901760, %v3858_v5 }
  0xb1   : > { %1416 = vmatpush.msrb.mxu3 %v3743_v0  ;;  %1177 = vmatpush.msrb.mxu0 %v3792_v39 }
  0xb2   : > { %1242 = vmatpush.msrb.mxu1 %v1241_v35  ;;  %1355 = vmatpush.msrb.mxu2 %v3784_v41  ;;  %v3869_v35 = vsub.f32 %v247_v27, %v3846_v59  ;;  %v1276_v27 = vsub.f32 %v3840_v3, %v4608_v45 }
  0xb3   : > { %1418 = vmatpush.msrb.mxu3 %v3749_v18  ;;  %1105 = vmatmul.f32.gmra.mxu2 %v3606_v40 }
  0xb4   : > { %1179 = vmatpush.msrb.mxu0 %v3802_v8  ;;  %1248 = vmatpush.msrb.mxu1 %v1247_v44  ;;  %v1265_v44 = vand.u32 4294901760, %v1264_v15  ;;  %v1271_v15 = vand.u32 4294901760, %v1270_v25  ;;  %v4612_v23 = vand.u32 4294901760, %v3869_v35  ;;  %v4616_v25 = vand.u32 4294901760, %v3878_v22 }
  0xb5   : > { %1358 = vmatpush.msrb.mxu2 %v3805_v12  ;;  %1420 = vmatpush.msrb.mxu3 %v3765_v20  ;;  %v1277_v45 = vand.u32 4294901760, %v1276_v27  ;;  %v3916_v27 = vsub.f32 %v239_v28, %v3891_v48 }
  0xb6   : > { %1154 = vmatmul.f32.gmra.mxu3 %v3606_v40  ;;  %1181 = vmatpush.msrb.mxu0 %v3820_v33 }
  0xb7   : > { %1254 = vmatpush.msrb.mxu1 %v1253_v31  ;;  %1361 = vmatpush.msrb.mxu2 %v3816_v46  ;;  %v3885_v31 = vand.u32 4294901760, %v241_v50 }
  0xb8   : > { %1422 = vmatpush.msrb.mxu3 %v3778_v56  ;;  %970 = vmatmul.f32.gmra.mxu0 %v3657_v34  ;;  %v3923_v34 = vand.u32 4294901760, %v235_v43 }
  0xb9   : > { %1020 = vmatmul.f32.gmra.mxu1 %v3638_v24  ;;  %1183 = vmatpush.msrb.mxu0 %v3834_v13  ;;  %v3904_v61 = vsub.f32 %v241_v50, %v3885_v31  ;;  %v297_v50 = vld [vmem:[#allocation5 + $0x1f8] sm:$0xff]  ;;  %v3930_v24 = vsub.f32 %v237_v32, %v3910_v29 }
  0xba   : > { %1260 = vmatpush.msrb.mxu1 %v1259_v63  ;;  %1364 = vmatpush.msrb.mxu2 %v3826_v51  ;;  %v1282_v63 = vsub.f32 %v3858_v5, %v4611_v21  ;;  %v4624_v21 = vand.u32 4294901760, %v3916_v27  ;;  %v3942_v32 = vsub.f32 %v235_v43, %v3923_v34  ;;  %v291_v43 = vld [vmem:[#allocation5 + $0x1c8] sm:$0xff] }
  0xbb   : > { %1424 = vmatpush.msrb.mxu3 %v3792_v39  ;;  %1185 = vmatpush.msrb.mxu0 %v3846_v59 }
  0xbc   : > { %1266 = vmatpush.msrb.mxu1 %v1265_v44  ;;  %1367 = vmatpush.msrb.mxu2 %v3840_v3  ;;  %v1288_v44 = vsub.f32 %v3869_v35, %v4612_v23  ;;  %v1294_v23 = vsub.f32 %v3878_v22, %v4616_v25 }
  0xbd   : > { %1426 = vmatpush.msrb.mxu3 %v3802_v8  ;;  %1109 = vmatmul.f32.gmra.mxu2 %v3643_v58 }
  0xbe   : > { %1187 = vmatpush.msrb.mxu0 %v3855_v54  ;;  %1272 = vmatpush.msrb.mxu1 %v1271_v15  ;;  %v1283_v15 = vand.u32 4294901760, %v1282_v63  ;;  %v1289_v28 = vand.u32 4294901760, %v1288_v44  ;;  %v3932_v63 = vand.u32 4294901760, %v297_v50  ;;  %v1295_v44 = vand.u32 4294901760, %v1294_v23 }
  0xbf   : > { %1370 = vmatpush.msrb.mxu2 %v3858_v5  ;;  %1428 = vmatpush.msrb.mxu3 %v3820_v33 }
  0xc0   : > { %1158 = vmatmul.f32.gmra.mxu3 %v3643_v58  ;;  %1189 = vmatpush.msrb.mxu0 %v3872_v60  ;;  %4716 = vst [vmem:[#allocation37_spill] sm:$0xff] %v3932_v63  ;;  %v3954_v23 = vsub.f32 %v297_v50, %v3932_v63  ;;  %v289_v58 = vld [vmem:[#allocation5 + $0x1b8] sm:$0xff] }
  0xc1   : > { %1278 = vmatpush.msrb.mxu1 %v1277_v45  ;;  %1373 = vmatpush.msrb.mxu2 %v3869_v35  ;;  %v4717_v45 = vand.u32 4294901760, %v3894_v53  ;;  %v3987_v40 = vand.u32 4294901760, %v289_v58 }
  0xc2   : > { %1430 = vmatpush.msrb.mxu3 %v3834_v13  ;;  %975 = vmatmul.f32.gmra.mxu0 %v3694_v10  ;;  %v293_v10 = vld [vmem:[#allocation5 + $0x1d8] sm:$0xff] }
  0xc3   : > { %1026 = vmatmul.f32.gmra.mxu1 %v3672_v55  ;;  %1191 = vmatpush.msrb.mxu0 %v3885_v31  ;;  %v1300_v25 = vsub.f32 %v3894_v53, %v4717_v45  ;;  %v4718_v55 = vand.u32 4294901760, %v3904_v61  ;;  %v3961_v6 = vand.u32 4294901760, %v293_v10  ;;  %4721 = vst [vmem:[#allocation38_spill] sm:$0xff] %v3987_v40 }
  0xc4   : > { %1284 = vmatpush.msrb.mxu1 %v1283_v15  ;;  %1376 = vmatpush.msrb.mxu2 %v3878_v22  ;;  %v3968_v15 = vsub.f32 %v295_v52, %v3949_v11 }
  0xc5   : > { %1432 = vmatpush.msrb.mxu3 %v3846_v59  ;;  %1193 = vmatpush.msrb.mxu0 %v3891_v48  ;;  %v1306_v26 = vsub.f32 %v3904_v61, %v4718_v55  ;;  %v1301_v45 = vand.u32 4294901760, %v1300_v25  ;;  %v1312_v55 = vsub.f32 %v3916_v27, %v4624_v21  ;;  %v3970_v25 = vand.u32 4294901760, %v291_v43 }
  0xc6   : > { %1290 = vmatpush.msrb.mxu1 %v1289_v28  ;;  %1379 = vmatpush.msrb.mxu2 %v3894_v53  ;;  %v4719_v21 = vand.u32 4294901760, %v3930_v24  ;;  %v4634_v28 = vand.u32 4294901760, %v3954_v23  ;;  %v3980_v52 = vsub.f32 %v293_v10, %v3961_v6 }
  0xc7   : > { %1434 = vmatpush.msrb.mxu3 %v3855_v54  ;;  %1113 = vmatmul.f32.gmra.mxu2 %v3679_v36  ;;  %v1307_v50 = vand.u32 4294901760, %v1306_v26  ;;  %v1313_v26 = vand.u32 4294901760, %v1312_v55  ;;  %v3992_v55 = vsub.f32 %v291_v43, %v3970_v25 }
  0xc8   : > { %1195 = vmatpush.msrb.mxu0 %v3910_v29  ;;  %1296 = vmatpush.msrb.mxu1 %v1295_v44  ;;  %v1318_v44 = vsub.f32 %v3930_v24, %v4719_v21  ;;  %v287_v21 = vld [vmem:[#allocation5 + $0x1a8] sm:$0xff] }
  0xc9   : > { %1382 = vmatpush.msrb.mxu2 %v3904_v61  ;;  %1436 = vmatpush.msrb.mxu3 %v3872_v60 }
  0xca   : > { %1162 = vmatmul.f32.gmra.mxu3 %v3679_v36  ;;  %1197 = vmatpush.msrb.mxu0 %v3923_v34  ;;  %v4720_v36 = vand.u32 4294901760, %v3942_v32  ;;  %v1319_v10 = vand.u32 4294901760, %v1318_v44  ;;  %v4007_v44 = vsub.f32 %v289_v58, %v3987_v40  ;;  %v4727_v58 = vand.u32 4294901760, %v3771_v17 }
  0xcb   : > { %1302 = vmatpush.msrb.mxu1 %v1301_v45  ;;  %1385 = vmatpush.msrb.mxu2 %v3916_v27  ;;  %v283_v45 = vld [vmem:[#allocation5 + $0x188] sm:$0xff] }
  0xcc   : > { %1438 = vmatpush.msrb.mxu3 %v3885_v31  ;;  %1032 = vmatmul.f32.gmra.mxu1 %v3708_v38  ;;  %v1324_v1 = vsub.f32 %v3942_v32, %v4720_v36  ;;  %v1668_v36 = vsub.f32 %v3954_v23, %v4634_v28  ;;  %v285_v38 = vld [vmem:[#allocation5 + $0x198] sm:$0xff]  ;;  %v4724_v28 = vand.u32 4294901760, %v3760_v19  ;;  %v4728_v19 = vand.u32 4294901760, %v3980_v52 }
  0xcd   : > { %1203 = vmatmul.f32.vlgmr.msrb.gmra.mxu0 %v4722_v57  ;;  %1308 = vmatpush.msrb.mxu1 %v1307_v50  ;;  %v4002_v50 = vand.u32 4294901760, %v287_v21  ;;  %v4016_v57 = vand.u32 4294901760, %v285_v38 }
  0xce   : > { %1388 = vmatpush.msrb.mxu2 %v3930_v24  ;;  %1440 = vmatpush.msrb.mxu3 %v3891_v48  ;;  %v1325_v43 = vand.u32 4294901760, %v1324_v1  ;;  %v1669_v1 = vand.u32 4294901760, %v1668_v36  ;;  %v4731_v36 = vand.u32 4294901760, %v3784_v41  ;;  %v4734_v41 = vand.u32 4294901760, %v3805_v12 }
  0xcf   : > { %1473 = vmatpush.msra.mxu0 %v4723_v9  ;;  %1314 = vmatpush.msrb.mxu1 %v1313_v26  ;;  %v4726_v9 = vand.u32 4294901760, %v3968_v15  ;;  %v281_v26 = vld [vmem:[#allocation5 + $0x178] sm:$0xff] }
  0xd0   : > { %1391 = vmatpush.msrb.mxu2 %v3942_v32  ;;  %1442 = vmatpush.msrb.mxu3 %v3910_v29 }
  0xd1   : > { %1477 = vmatpush.msra.mxu0 %v4724_v28  ;;  %1394 = vmatmul.f32.vlgmr.msrb.gmra.mxu2 %v4725_v62  ;;  %v1674_v4 = vsub.f32 %v3968_v15, %v4726_v9  ;;  %v1680_v62 = vsub.f32 %v3980_v52, %v4728_v19  ;;  %v4026_v28 = vsub.f32 %v287_v21, %v4002_v50  ;;  %v4028_v9 = vand.u32 4294901760, %v283_v45 }
  0xd2   : > { %1320 = vmatpush.msrb.mxu1 %v1319_v10  ;;  %1444 = vmatpush.msrb.mxu3 %v3923_v34  ;;  %v4730_v10 = vld [vmem:[#allocation15_spill] sm:$0xff]  ;;  %v4732_v19 = vand.u32 4294901760, %v3992_v55 }
  0xd3   : > { %1481 = vmatpush.msra.mxu0 %v4727_v58  ;;  %1601 = vmatpush.msra.mxu2 %v3932_v63  ;;  %v4030_v29 = vpop.f32.mrf.mxu0  ;;  %v1675_v58 = vand.u32 4294901760, %v1674_v4  ;;  %v4041_v63 = vsub.f32 %v285_v38, %v4016_v57  ;;  %v4639_v4 = vand.u32 4294901760, %v4026_v28  ;;  %v4051_v17 = vsub.f32 %v283_v45, %v4028_v9  ;;  %v275_v45 = vld [vmem:[#allocation5 + $0x148] sm:$0xff] }
  0xd4   : > { %4729 = vst [vmem:[#allocation18_spill] sm:$0xff] %v4030_v29  ;;  %1448 = vmatmul.f32.vlgmr.msrb.gmra.mxu3 %v4730_v10  ;;  %1326 = vmatpush.msrb.mxu1 %v1325_v43  ;;  %v1686_v21 = vsub.f32 %v3992_v55, %v4732_v19  ;;  %v4733_v29 = vld [vmem:[#allocation21_spill] sm:$0xff]  ;;  %v4044_v10 = vand.u32 4294901760, %v281_v26  ;;  %v4735_v38 = vand.u32 4294901760, %v4007_v44  ;;  %v4736_v19 = vand.u32 4294901760, %v3816_v46 }
  0xd5   : > { %1485 = vmatpush.msra.mxu0 %v4731_v36  ;;  %1603 = vmatpush.msra.mxu2 %v3949_v11  ;;  %v279_v43 = vld [vmem:[#allocation5 + $0x168] sm:$0xff]  ;;  %v1681_v36 = vand.u32 4294901760, %v1680_v62  ;;  %v1698_v46 = vsub.f32 %v4026_v28, %v4639_v4 }
  0xd6   : > { %1670 = vmatpush.msra.mxu3 %v1669_v1  ;;  %1211 = vmatmul.f32.gmra.mxu0 %v4733_v29  ;;  %v1692_v29 = vsub.f32 %v4007_v44, %v4735_v38  ;;  %v277_v1 = vld [vmem:[#allocation5 + $0x158] sm:$0xff]  ;;  %v1687_v12 = vand.u32 4294901760, %v1686_v21  ;;  %v4737_v38 = vld [vmem:[#allocation17_spill] sm:$0xff] }
  0xd7   : > { %1328 = vmatmul.f32.vlgmr.msrb.gmra.mxu1 %v3270_v2  ;;  %1489 = vmatpush.msra.mxu0 %v4734_v41  ;;  %v4061_v41 = vand.u32 4294901760, %v279_v43  ;;  %v4073_v21 = vand.u32 4294901760, %v277_v1 }
  0xd8   : > { %1552 = vmatpush.msra.mxu1 %v3736_v14  ;;  %1605 = vmatpush.msra.mxu2 %v3961_v6  ;;  %v4066_v14 = vsub.f32 %v281_v26, %v4044_v10  ;;  %v1693_v26 = vand.u32 4294901760, %v1692_v29 }
  0xd9   : > { %1676 = vmatpush.msra.mxu3 %v1675_v58  ;;  %1493 = vmatpush.msra.mxu0 %v4736_v19  ;;  %v4087_v4 = vsub.f32 %v279_v43, %v4061_v41  ;;  %v4089_v58 = vand.u32 4294901760, %v275_v45  ;;  %v4745_v43 = vand.u32 4294901760, %v4051_v17 }
  0xda   : > { %1554 = vmatpush.msra.mxu1 %v3743_v0  ;;  %1607 = vmatpush.msra.mxu2 %v3970_v25  ;;  %v4739_v0 = vand.u32 4294901760, %v3826_v51  ;;  %v4642_v29 = vand.u32 4294901760, %v4066_v14 }
  0xdb   : > { %1682 = vmatpush.msra.mxu3 %v1681_v36  ;;  %1399 = vmatmul.f32.gmra.mxu2 %v4737_v38  ;;  %v4075_v19 = vpop.f32.mrf.mxu0  ;;  %v4741_v36 = vand.u32 4294901760, %v4041_v63 }
  0xdc   : > { %4738 = vst [vmem:[#allocation13_spill] sm:$0xff] %v4075_v19  ;;  %1497 = vmatpush.msra.mxu0 %v4739_v0  ;;  %1556 = vmatpush.msra.mxu1 %v3749_v18  ;;  %v4080_v62 = vpop.f32.mrf.mxu1  ;;  %v273_v19 = vld [vmem:[#allocation5 + $0x138] sm:$0xff]  ;;  %v4744_v18 = vand.u32 4294901760, %v3840_v3  ;;  %v4747_v3 = vld [vmem:[#allocation22_spill] sm:$0xff] }
  0xdd   : > { %4740 = vst [vmem:[#allocation15_spill] sm:$0xff] %v4080_v62  ;;  %1609 = vmatpush.msra.mxu2 %v3987_v40  ;;  %1688 = vmatpush.msra.mxu3 %v1687_v12  ;;  %v1704_v38 = vsub.f32 %v4041_v63, %v4741_v36  ;;  %v4091_v51 = vpop.f32.mrf.mxu2  ;;  %v4743_v0 = vld [vmem:[#allocation19_spill] sm:$0xff]  ;;  %v1699_v12 = vand.u32 4294901760, %v1698_v46  ;;  %v1710_v36 = vsub.f32 %v4051_v17, %v4745_v43  ;;  %v4105_v40 = vpop.f32.mrf.mxu3 }
  0xde   : > { %4742 = vst [vmem:[#allocation21_spill] sm:$0xff] %v4091_v51  ;;  %1454 = vmatmul.f32.gmra.mxu3 %v4743_v0  ;;  %1501 = vmatpush.msra.mxu0 %v4744_v18  ;;  %v4103_v62 = vsub.f32 %v277_v1, %v4073_v21  ;;  %v271_v51 = vld [vmem:[#allocation5 + $0x128] sm:$0xff]  ;;  %v4108_v0 = vand.u32 4294901760, %v273_v19  ;;  %v4115_v43 = vsub.f32 %v275_v45, %v4089_v58  ;;  %v269_v1 = vld [vmem:[#allocation5 + $0x118] sm:$0xff] }
  0xdf   : > { %1558 = vmatpush.msra.mxu1 %v3765_v20  ;;  %1611 = vmatpush.msra.mxu2 %v4002_v50  ;;  %4746 = vst [vmem:[#allocation17_spill] sm:$0xff] %v4105_v40  ;;  %v4748_v20 = vand.u32 4294901760, %v3858_v5  ;;  %v1705_v46 = vand.u32 4294901760, %v1704_v38  ;;  %v4749_v5 = vand.u32 4294901760, %v3869_v35  ;;  %v1711_v38 = vand.u32 4294901760, %v1710_v36  ;;  %v267_v45 = vld [vmem:[#allocation5 + $0x108] sm:$0xff] }
  0xe0   : > { %1694 = vmatpush.msra.mxu3 %v1693_v26  ;;  %1219 = vmatmul.f32.gmra.mxu0 %v4747_v3  ;;  %v1716_v26 = vsub.f32 %v4066_v14, %v4642_v29  ;;  %v4122_v3 = vand.u32 4294901760, %v271_v51  ;;  %v4132_v18 = vand.u32 4294901760, %v269_v1  ;;  %v4750_v29 = vld [vmem:[#allocation20_spill] sm:$0xff]  ;;  %v1733_v36 = vand.u32 4294901760, %v4115_v43 }
  0xe1   : > { %1332 = vmatmul.f32.gmra.mxu1 %v3307_v47  ;;  %1505 = vmatpush.msra.mxu0 %v4748_v20 }
  0xe2   : > { %1560 = vmatpush.msra.mxu1 %v3778_v56  ;;  %1613 = vmatpush.msra.mxu2 %v4016_v57  ;;  %v4130_v56 = vsub.f32 %v273_v19, %v4108_v0  ;;  %v1717_v19 = vand.u32 4294901760, %v1716_v26  ;;  %v4145_v20 = vsub.f32 %v271_v51, %v4122_v3  ;;  %v4162_v26 = vsub.f32 %v269_v1, %v4132_v18 }
  0xe3   : > { %1700 = vmatpush.msra.mxu3 %v1699_v12  ;;  %1509 = vmatpush.msra.mxu0 %v4749_v5  ;;  %v4751_v12 = vand.u32 4294901760, %v4087_v4 }
  0xe4   : > { %1562 = vmatpush.msra.mxu1 %v3792_v39  ;;  %1615 = vmatpush.msra.mxu2 %v4028_v9  ;;  %v4752_v39 = vand.u32 4294901760, %v3878_v22  ;;  %v1739_v51 = vand.u32 4294901760, %v4130_v56 }
  0xe5   : > { %1706 = vmatpush.msra.mxu3 %v1705_v46  ;;  %1404 = vmatmul.f32.gmra.mxu2 %v4750_v29  ;;  %v1722_v35 = vsub.f32 %v4087_v4, %v4751_v12  ;;  %v4139_v5 = vpop.f32.mrf.mxu0  ;;  %v4147_v46 = vand.u32 4294901760, %v267_v45  ;;  %v4753_v12 = vand.u32 4294901760, %v4103_v62 }
  0xe6   : > { %1513 = vmatpush.msra.mxu0 %v4752_v39  ;;  %1564 = vmatpush.msra.mxu1 %v3802_v8  ;;  %v4149_v29 = vpop.f32.mrf.mxu1  ;;  %v4151_v40 = vpop.f32.mrf.mxu2  ;;  %v4754_v8 = vand.u32 4294901760, %v3894_v53 }
  0xe7   : > { %1617 = vmatpush.msra.mxu2 %v4044_v10  ;;  %1712 = vmatpush.msra.mxu3 %v1711_v38  ;;  %v1728_v22 = vsub.f32 %v4103_v62, %v4753_v12  ;;  %v1723_v39 = vand.u32 4294901760, %v1722_v35  ;;  %v1734_v38 = vsub.f32 %v4115_v43, %v1733_v36  ;;  %v4174_v53 = vsub.f32 %v267_v45, %v4147_v46 }
  0xe8   : > { %1460 = vmatmul.f32.gmra.mxu3 %v3434_v49  ;;  %1517 = vmatpush.msra.mxu0 %v4754_v8  ;;  %v1745_v49 = vand.u32 4294901760, %v4145_v20  ;;  %v1740_v35 = vsub.f32 %v4130_v56, %v1739_v51  ;;  %v4756_v45 = vand.u32 4294901760, %v3916_v27  ;;  %v4757_v8 = vand.u32 4294901760, %v3930_v24 }
  0xe9   : > { %1566 = vmatpush.msra.mxu1 %v3820_v33  ;;  %1619 = vmatpush.msra.mxu2 %v4061_v41  ;;  %v4169_v12 = vpop.f32.mrf.mxu3  ;;  %v4755_v33 = vand.u32 4294901760, %v3904_v61  ;;  %v1729_v1 = vand.u32 4294901760, %v1728_v22 }
  0xea   : > { %1718 = vmatpush.msra.mxu3 %v1717_v19  ;;  %1227 = vmatmul.f32.gmra.mxu0 %v3553_v7  ;;  %v1751_v7 = vand.u32 4294901760, %v4162_v26  ;;  %v1735_v19 = vand.u32 4294901760, %v1734_v38  ;;  %v1746_v61 = vsub.f32 %v4145_v20, %v1745_v49  ;;  %v1741_v27 = vand.u32 4294901760, %v1740_v35  ;;  %v4760_v35 = vld [vmem:[#allocation36_spill] sm:$0xff] }
  0xeb   : > { %1336 = vmatmul.f32.gmra.mxu1 %v3381_v37  ;;  %1521 = vmatpush.msra.mxu0 %v4755_v33 }
  0xec   : > { %1568 = vmatpush.msra.mxu1 %v3834_v13  ;;  %1621 = vmatpush.msra.mxu2 %v4073_v21  ;;  %v1757_v13 = vand.u32 4294901760, %v4174_v53  ;;  %v1747_v24 = vand.u32 4294901760, %v1746_v61  ;;  %v4763_v61 = vand.u32 4294901760, %v3968_v15 }
  0xed   : > { %1724 = vmatpush.msra.mxu3 %v1723_v39  ;;  %1525 = vmatpush.msra.mxu0 %v4756_v45 }
  0xee   : > { %1570 = vmatpush.msra.mxu1 %v3846_v59  ;;  %1623 = vmatpush.msra.mxu2 %v4089_v58  ;;  %v1752_v59 = vsub.f32 %v4162_v26, %v1751_v7 }
  0xef   : > { %1730 = vmatpush.msra.mxu3 %v1729_v1  ;;  %1409 = vmatmul.f32.gmra.mxu2 %v3475_v16  ;;  %v4194_v22 = vpop.f32.mrf.mxu0  ;;  %v4758_v16 = vand.u32 4294901760, %v3942_v32 }
  0xf0   : > { %1529 = vmatpush.msra.mxu0 %v4757_v8  ;;  %1572 = vmatpush.msra.mxu1 %v3855_v54  ;;  %v4202_v39 = vpop.f32.mrf.mxu1  ;;  %v4204_v38 = vpop.f32.mrf.mxu2  ;;  %v1758_v54 = vsub.f32 %v4174_v53, %v1757_v13  ;;  %v1753_v1 = vand.u32 4294901760, %v1752_v59 }
  0xf1   : > { %1625 = vmatpush.msra.mxu2 %v4108_v0  ;;  %1736 = vmatpush.msra.mxu3 %v1735_v19  ;;  %v4762_v19 = vld [vmem:[#allocation23_spill] sm:$0xff] }
  0xf2   : > { %1466 = vmatmul.f32.gmra.mxu3 %v3503_v42  ;;  %1533 = vmatpush.msra.mxu0 %v4758_v16  ;;  %v1759_v42 = vand.u32 4294901760, %v1758_v54  ;;  %v4768_v16 = vand.u32 4294901760, %v4007_v44 }
  0xf3   : > { %1574 = vmatpush.msra.mxu1 %v3872_v60  ;;  %1627 = vmatpush.msra.mxu2 %v4122_v3  ;;  %v4215_v33 = vpop.f32.mrf.mxu3  ;;  %v4759_v60 = vld [vmem:[#allocation28_spill] sm:$0xff] }
  0xf4   : > { %1742 = vmatpush.msra.mxu3 %v1741_v27  ;;  %1340 = vmatmul.f32.gmra.mxu1 %v3448_v30  ;;  %v4764_v27 = vld [vmem:[#allocation37_spill] sm:$0xff] }
  0xf5   : > { %1535 = vmatmul.f32.vlgmr.msra.gmra.mxu0 %v3270_v2  ;;  %1576 = vmatpush.msra.mxu1 %v3885_v31 }
  0xf6   : > { %1629 = vmatpush.msra.mxu2 %v4132_v18  ;;  %1748 = vmatpush.msra.mxu3 %v1747_v24 }
  0xf7   : > { %1780 = vmatpush.msrb.mxu0 %v3954_v23  ;;  %1578 = vmatpush.msra.mxu1 %v3891_v48  ;;  %v4761_v48 = vand.u32 4294901760, %v3954_v23  ;;  %v4765_v23 = vand.u32 4294901760, %v3980_v52 }
  0xf8   : > { %1631 = vmatpush.msra.mxu2 %v4147_v46  ;;  %1754 = vmatpush.msra.mxu3 %v1753_v1  ;;  %v4775_v1 = vand.u32 4294901760, %v4066_v14 }
  0xf9   : > { %1783 = vmatpush.msrb.mxu0 %v3968_v15  ;;  %1637 = vmatmul.f32.vlgmr.msra.gmra.mxu2 %v4759_v60  ;;  %v4226_v32 = vpop.f32.mrf.mxu1  ;;  %v4767_v15 = vld [vmem:[#allocation14_spill] sm:$0xff] }
  0xfa   : > { %1580 = vmatpush.msra.mxu1 %v4760_v35  ;;  %1760 = vmatpush.msra.mxu3 %v1759_v42  ;;  %v4229_v31 = vpop.f32.mrf.mxu0  ;;  %v4231_v45 = vpop.f32.mrf.mxu2  ;;  %v4789_v35 = vld [vmem:[#allocation21_spill] sm:$0xff] }
  0xfb   : > { %1786 = vmatpush.msrb.mxu0 %v3980_v52  ;;  %1907 = vmatpush.msrb.mxu2 %v4761_v48 }
  0xfc   : > { %1762 = vmatmul.f32.vlgmr.msra.gmra.mxu3 %v4762_v19  ;;  %1582 = vmatpush.msra.mxu1 %v3923_v34  ;;  %v4766_v34 = vand.u32 4294901760, %v3992_v55 }
  0xfd   : > { %1789 = vmatpush.msrb.mxu0 %v3992_v55  ;;  %1911 = vmatpush.msrb.mxu2 %v4763_v61  ;;  %v4241_v8 = vpop.f32.mrf.mxu3  ;;  %v4770_v55 = vand.u32 4294901760, %v4026_v28  ;;  %v4790_v61 = vld [vmem:[#allocation17_spill] sm:$0xff] }
  0xfe   : > { %1986 = vmatpush.msrb.mxu3 %v4764_v27  ;;  %1539 = vmatmul.f32.gmra.mxu0 %v3307_v47 }
  0xff   : > { %1584 = vmatmul.f32.vlgmr.msra.gmra.mxu1 %v3270_v2  ;;  %1792 = vmatpush.msrb.mxu0 %v4007_v44  ;;  %v4772_v44 = vand.u32 4294901760, %v4041_v63 }
 0x100   : > { %1848 = vmatpush.msrb.mxu1 %v4764_v27  ;;  %1915 = vmatpush.msrb.mxu2 %v4765_v23 }
 0x101   : > { %1988 = vmatpush.msrb.mxu3 %v3949_v11  ;;  %1795 = vmatpush.msrb.mxu0 %v4026_v28  ;;  %v4774_v28 = vld [vmem:[#allocation33_spill] sm:$0xff] }
 0x102   : > { %1850 = vmatpush.msrb.mxu1 %v3949_v11  ;;  %1919 = vmatpush.msrb.mxu2 %v4766_v34  ;;  %v4769_v11 = vld [vmem:[#allocation26_spill] sm:$0xff] }
 0x103   : > { %1990 = vmatpush.msrb.mxu3 %v3961_v6  ;;  %1645 = vmatmul.f32.gmra.mxu2 %v4767_v15  ;;  %v4257_v2 = vpop.f32.mrf.mxu0 }
 0x104   : > { %1798 = vmatpush.msrb.mxu0 %v4041_v63  ;;  %1852 = vmatpush.msrb.mxu1 %v3961_v6  ;;  %v4261_v52 = vpop.f32.mrf.mxu1  ;;  %v4263_v59 = vpop.f32.mrf.mxu2  ;;  %v4771_v6 = vld [vmem:[#allocation38_spill] sm:$0xff] }
 0x105   : > { %1923 = vmatpush.msrb.mxu2 %v4768_v16  ;;  %1992 = vmatpush.msrb.mxu3 %v3970_v25  ;;  %v4792_v16 = vld [vmem:[#allocation32_spill] sm:$0xff] }
 0x106   : > { %1766 = vmatmul.f32.gmra.mxu3 %v4769_v11  ;;  %1801 = vmatpush.msrb.mxu0 %v4051_v17 }
 0x107   : > { %1854 = vmatpush.msrb.mxu1 %v3970_v25  ;;  %1927 = vmatpush.msrb.mxu2 %v4770_v55  ;;  %v4273_v24 = vpop.f32.mrf.mxu3  ;;  %v4773_v25 = vand.u32 4294901760, %v4051_v17  ;;  %v4777_v17 = vand.u32 4294901760, %v4087_v4 }
 0x108   : > { %1994 = vmatpush.msrb.mxu3 %v4771_v6  ;;  %1543 = vmatmul.f32.gmra.mxu0 %v3381_v37 }
 0x109   : > { %1588 = vmatmul.f32.gmra.mxu1 %v3307_v47  ;;  %1804 = vmatpush.msrb.mxu0 %v4066_v14  ;;  %v4781_v14 = vld [vmem:[#allocation24_spill] sm:$0xff] }
 0x10a   : > { %1856 = vmatpush.msrb.mxu1 %v4771_v6  ;;  %1931 = vmatpush.msrb.mxu2 %v4772_v44 }
 0x10b   : > { %1996 = vmatpush.msrb.mxu3 %v4002_v50  ;;  %1807 = vmatpush.msrb.mxu0 %v4087_v4 }
 0x10c   : > { %1858 = vmatpush.msrb.mxu1 %v4002_v50  ;;  %1935 = vmatpush.msrb.mxu2 %v4773_v25  ;;  %v4776_v50 = vld [vmem:[#allocation30_spill] sm:$0xff] }
 0x10d   : > { %1998 = vmatpush.msrb.mxu3 %v4016_v57  ;;  %1653 = vmatmul.f32.gmra.mxu2 %v4774_v28  ;;  %v4289_v47 = vpop.f32.mrf.mxu0 }
 0x10e   : > { %1810 = vmatpush.msrb.mxu0 %v4103_v62  ;;  %1860 = vmatpush.msrb.mxu1 %v4016_v57  ;;  %v4293_v63 = vpop.f32.mrf.mxu1  ;;  %v4295_v54 = vpop.f32.mrf.mxu2  ;;  %v4778_v57 = vand.u32 4294901760, %v4103_v62  ;;  %v4780_v62 = vld [vmem:[#allocation31_spill] sm:$0xff] }
 0x10f   : > { %1939 = vmatpush.msrb.mxu2 %v4775_v1  ;;  %2000 = vmatpush.msrb.mxu3 %v4028_v9 }
 0x110   : > { %1770 = vmatmul.f32.gmra.mxu3 %v4776_v50  ;;  %1813 = vmatpush.msrb.mxu0 %v4115_v43  ;;  %v4783_v43 = vld [vmem:[#allocation27_spill] sm:$0xff] }
 0x111   : > { %1862 = vmatpush.msrb.mxu1 %v4028_v9  ;;  %1943 = vmatpush.msrb.mxu2 %v4777_v17  ;;  %v4305_v42 = vpop.f32.mrf.mxu3  ;;  %v4779_v9 = vld [vmem:[#allocation35_spill] sm:$0xff] }
 0x112   : > { %2002 = vmatpush.msrb.mxu3 %v4044_v10  ;;  %1547 = vmatmul.f32.gmra.mxu0 %v3448_v30 }
 0x113   : > { %1592 = vmatmul.f32.gmra.mxu1 %v3381_v37  ;;  %1816 = vmatpush.msrb.mxu0 %v4130_v56 }
 0x114   : > { %1864 = vmatpush.msrb.mxu1 %v4044_v10  ;;  %1947 = vmatpush.msrb.mxu2 %v4778_v57 }
 0x115   : > { %2004 = vmatpush.msrb.mxu3 %v4061_v41  ;;  %1819 = vmatpush.msrb.mxu0 %v4145_v20  ;;  %v4784_v20 = vld [vmem:[#allocation13_spill] sm:$0xff] }
 0x116   : > { %1866 = vmatpush.msrb.mxu1 %v4061_v41  ;;  %1951 = vmatpush.msrb.mxu2 %v1733_v36  ;;  %v466_v56 = vadd.f32 %v4149_v29, %v4784_v20  ;;  %v4785_v36 = vld [vmem:[#allocation18_spill] sm:$0xff]  ;;  %v4788_v29 = vld [vmem:[#allocation12_spill] sm:$0xff] }
 0x117   : > { %2006 = vmatpush.msrb.mxu3 %v4073_v21  ;;  %1661 = vmatmul.f32.gmra.mxu2 %v4779_v9  ;;  %v4321_v37 = vpop.f32.mrf.mxu0 }
 0x118   : > { %1822 = vmatpush.msrb.mxu0 %v4162_v26  ;;  %1868 = vmatpush.msrb.mxu1 %v4073_v21  ;;  %v725_v10 = vpop.f32.mrf.mxu1  ;;  %v786_v4 = vpop.f32.mrf.mxu2 }
 0x119   : > { %1955 = vmatpush.msrb.mxu2 %v1739_v51  ;;  %2008 = vmatpush.msrb.mxu3 %v4089_v58  ;;  %v4786_v51 = vld [vmem:[#allocation15_spill] sm:$0xff] }
 0x11a   : > { %1774 = vmatmul.f32.gmra.mxu3 %v4780_v62  ;;  %1825 = vmatpush.msrb.mxu0 %v4174_v53  ;;  %v462_v26 = vadd.f32 %v4786_v51, %v4785_v36  ;;  %v4787_v53 = vld [vmem:[#allocation29_spill] sm:$0xff] }
 0x11b   : > { %1870 = vmatpush.msrb.mxu1 %v4089_v58  ;;  %1959 = vmatpush.msrb.mxu2 %v1745_v49  ;;  %v4333_v41 = vpop.f32.mrf.mxu3 }
 0x11c   : > { %2010 = vmatpush.msrb.mxu3 %v4108_v0  ;;  %1596 = vmatmul.f32.gmra.mxu1 %v3448_v30 }
 0x11d   : > { %1828 = vmatmul.f32.vlgmr.msrb.gmra.mxu0 %v4781_v14  ;;  %1872 = vmatpush.msrb.mxu1 %v4108_v0  ;;  %v4782_v0 = vld [vmem:[#allocation25_spill] sm:$0xff] }
 0x11e   : > { %1963 = vmatpush.msrb.mxu2 %v1751_v7  ;;  %2012 = vmatpush.msrb.mxu3 %v4122_v3 }
 0x11f   : > { %1874 = vmatpush.msrb.mxu1 %v4122_v3 }
 0x120   : > { %1967 = vmatpush.msrb.mxu2 %v1757_v13  ;;  %2014 = vmatpush.msrb.mxu3 %v4132_v18 }
 0x121   : > { %1969 = vmatmul.f32.vlgmr.msrb.gmra.mxu2 %v4762_v19  ;;  %1876 = vmatpush.msrb.mxu1 %v4132_v18  ;;  %v729_v30 = vpop.f32.mrf.mxu1  ;;  %v470_v18 = vadd.f32 %v4202_v39, %v4139_v5  ;;  %v528_v5 = vadd.f32 %v4789_v35, %v462_v26 }
 0x122   : > { %2016 = vmatpush.msrb.mxu3 %v4147_v46  ;;  %v961_v58 = vpop.f32.mrf.mxu0  ;;  %v794_v21 = vpop.f32.mrf.mxu2 }
 0x123   : > { %2018 = vmatmul.f32.vlgmr.msrb.gmra.mxu3 %v4762_v19  ;;  %1878 = vmatpush.msrb.mxu1 %v4147_v46  ;;  %v533_v46 = vadd.f32 %v4151_v40, %v466_v56  ;;  %v538_v60 = vadd.f32 %v4204_v38, %v470_v18  ;;  %v582_v27 = vadd.f32 %v4790_v61, %v528_v5 }
 0x124   : > { %1882 = vmatmul.f32.vlgmr.msrb.gmra.mxu1 %v4782_v0  ;;  %v474_v40 = vadd.f32 %v4226_v32, %v4194_v22 }
 0x125   : > { %1833 = vmatmul.f32.gmra.mxu0 %v4783_v43  ;;  %v907_v3 = vpop.f32.mrf.mxu3  ;;  %v588_v48 = vadd.f32 %v4169_v12, %v533_v46  ;;  %v594_v19 = vadd.f32 %v4215_v33, %v538_v60  ;;  %v669_v34 = vadd.f32 %v4229_v31, %v582_v27  ;;  %v4791_v12 = vld [vmem:[#allocation16_spill] sm:$0xff] }
 0x126   : > { %v543_v55 = vadd.f32 %v4231_v45, %v474_v40 }
 0x127   : > { %v673_v23 = vadd.f32 %v4257_v2, %v588_v48  ;;  %v677_v38 = vadd.f32 %v4289_v47, %v594_v19  ;;  %v718_v22 = vadd.f32 %v4261_v52, %v669_v34 }
 0x128   : > { %v600_v25 = vadd.f32 %v4241_v8, %v543_v55 }
 0x129   : > { %1973 = vmatmul.f32.gmra.mxu2 %v4769_v11  ;;  %v722_v15 = vadd.f32 %v4293_v63, %v673_v23  ;;  %v726_v33 = vadd.f32 %v725_v10, %v677_v38  ;;  %v771_v28 = vadd.f32 %v4263_v59, %v718_v22  ;;  %v4793_v63 = vld [vmem:[#allocation34_spill] sm:$0xff] }
 0x12a   : > { %v681_v45 = vadd.f32 %v4321_v37, %v600_v25 }
 0x12b   : > { %2022 = vmatmul.f32.gmra.mxu3 %v4769_v11  ;;  %v966_v49 = vpop.f32.mrf.mxu0  ;;  %v779_v6 = vadd.f32 %v4295_v54, %v722_v15  ;;  %v787_v44 = vadd.f32 %v786_v4, %v726_v33  ;;  %v896_v54 = vadd.f32 %v4273_v24, %v771_v28 }
 0x12c   : > { %1888 = vmatmul.f32.gmra.mxu1 %v4787_v53  ;;  %v1015_v7 = vpop.f32.mrf.mxu1  ;;  %v1102_v13 = vpop.f32.mrf.mxu2  ;;  %v730_v1 = vadd.f32 %v729_v30, %v681_v45 }
 0x12d   : > { %1838 = vmatmul.f32.gmra.mxu0 %v4788_v29  ;;  %v900_v47 = vadd.f32 %v4305_v42, %v779_v6  ;;  %v904_v52 = vadd.f32 %v4333_v41, %v787_v44  ;;  %v962_v9 = vadd.f32 %v961_v58, %v896_v54 }
 0x12f   : > { %v1151_v39 = vpop.f32.mrf.mxu3  ;;  %v1016_v14 = vadd.f32 %v1015_v7, %v962_v9 }
 0x131   : > { %1977 = vmatmul.f32.gmra.mxu2 %v4776_v50  ;;  %v1103_v20 = vadd.f32 %v1102_v13, %v1016_v14 }
 0x133   : > { %2026 = vmatmul.f32.gmra.mxu3 %v4776_v50  ;;  %v967_v50 = vadd.f32 %v966_v49, %v900_v47  ;;  %v1152_v30 = vadd.f32 %v1151_v39, %v1103_v20 }
 0x134   : > { %1894 = vmatmul.f32.gmra.mxu1 %v4791_v12 }
 0x135   : > { %1843 = vmatmul.f32.gmra.mxu0 %v4792_v16  ;;  %v971_v11 = vpop.f32.mrf.mxu0  ;;  %v4395_v53 = vand.u32 4294901760, %v1152_v30 }
 0x136   : > { %v1021_v32 = vpop.f32.mrf.mxu1  ;;  %v1106_v2 = vpop.f32.mrf.mxu2  ;;  %v972_v17 = vadd.f32 %v971_v11, %v904_v52  ;;  %v2034_v11 = vld [vmem:[#allocation7] sm:$0xff] }
 0x137   : > { %v1022_v8 = vadd.f32 %v1021_v32, %v967_v50  ;;  %v2135_v29 = vsub.f32 %v1152_v30, %v4395_v53  ;;  %v2040_v22 = vsel %vm2038_vm0, %v2034_v11, 0 }
 0x138   : > { %v4409_v6 = vand.u32 4294901760, %v2040_v22 }
 0x139   : > { %1981 = vmatmul.f32.gmra.mxu2 %v4780_v62  ;;  %v1155_v31 = vpop.f32.mrf.mxu3  ;;  %v1107_v37 = vadd.f32 %v1106_v2, %v1022_v8  ;;  %v2136_v34 = vand.u32 4294901760, %v2135_v29 }
 0x13b   : > { %2030 = vmatmul.f32.gmra.mxu3 %v4780_v62  ;;  %v795_v62 = vadd.f32 %v794_v21, %v730_v1  ;;  %v1156_v41 = vadd.f32 %v1155_v31, %v1107_v37  ;;  %v2137_v2 = vsub.f32 %v2135_v29, %v2136_v34  ;;  %v4412_v31 = vsub.f32 %v2040_v22, %v4409_v6  ;;  %v2035_v1 = vld [vmem:[#allocation7 + $0x8] sm:$0xff]  ;;  %v2036_v37 = vld [vmem:[#allocation7 + $0x10] sm:$0xff] }
 0x13c   : > { %1900 = vmatmul.f32.gmra.mxu1 %v4793_v63 }
 0x13d   : > { %v908_v43 = vadd.f32 %v907_v3, %v795_v62  ;;  %v4393_v49 = vand.u32 4294901760, %v1156_v41  ;;  %v2138_v45 = vand.u32 4294901760, %v2137_v2  ;;  %v4417_v63 = vand.u32 4294901760, %v4412_v31 }
 0x13f   : > { %v976_v57 = vpop.f32.mrf.mxu0  ;;  %v2129_v13 = vsub.f32 %v1156_v41, %v4393_v49  ;;  %v2074_v54 = vsub.f32 %v4412_v31, %v4417_v63 }
 0x140   : > { %v1027_v10 = vpop.f32.mrf.mxu1  ;;  %v1110_v59 = vpop.f32.mrf.mxu2  ;;  %v977_v18 = vadd.f32 %v976_v57, %v908_v43  ;;  %v2043_v57 = vsel %vm2038_vm0, %v2035_v1, 0  ;;  %v2046_v43 = vsel %vm2038_vm0, %v2036_v37, 0 }
 0x141   : > { %v1028_v4 = vadd.f32 %v1027_v10, %v972_v17  ;;  %v2130_v27 = vand.u32 4294901760, %v2129_v13  ;;  %v4424_v9 = vand.u32 4294901760, %v2074_v54  ;;  %v4427_v8 = vand.u32 4294901760, %v2043_v57 }
 0x143   : > { %v1111_v42 = vadd.f32 %v1110_v59, %v1028_v4  ;;  %v1159_v0 = vpop.f32.mrf.mxu3  ;;  %v2131_v16 = vsub.f32 %v2129_v13, %v2130_v27  ;;  %v4434_v59 = vsub.f32 %v2043_v57, %v4427_v8 }
 0x145   : > { %v1160_v56 = vadd.f32 %v1159_v0, %v1111_v42  ;;  %v2132_v44 = vand.u32 4294901760, %v2131_v16  ;;  %v4438_v4 = vand.u32 4294901760, %v4434_v59 }
 0x147   : > { %v4391_v36 = vand.u32 4294901760, %v1160_v56  ;;  %v2082_v0 = vsub.f32 %v4434_v59, %v4438_v4 }
 0x149   : > { %v1033_v24 = vpop.f32.mrf.mxu1  ;;  %v2123_v7 = vsub.f32 %v1160_v56, %v4391_v36  ;;  %v4448_v20 = vand.u32 4294901760, %v2082_v0  ;;  %v4451_v56 = vand.u32 4294901760, %v2046_v43 }
 0x14a   : > { %v1034_v51 = vadd.f32 %v1033_v24, %v977_v18  ;;  %v1204_v58 = vpop.f32.mrf.mxu0  ;;  %v1114_v26 = vpop.f32.mrf.mxu2 }
 0x14b   : > { %v2124_v5 = vand.u32 4294901760, %v2123_v7  ;;  %v4455_v18 = vsub.f32 %v2046_v43, %v4451_v56 }
 0x14c   : > { %v1115_v46 = vadd.f32 %v1114_v26, %v1034_v51 }
 0x14d   : > { %v1163_v21 = vpop.f32.mrf.mxu3  ;;  %v2125_v38 = vsub.f32 %v2123_v7, %v2124_v5  ;;  %v4458_v24 = vand.u32 4294901760, %v4455_v18 }
 0x14e   : > { %v1164_v3 = vadd.f32 %v1163_v21, %v1115_v46 }
 0x14f   : > { %v2126_v32 = vand.u32 4294901760, %v2125_v38  ;;  %v2090_v30 = vsub.f32 %v4455_v18, %v4458_v24 }
 0x150   : > { %v2063_v60 = vand.u32 4294901760, %v1164_v3 }
 0x151   : > { %v4465_v46 = vand.u32 4294901760, %v2090_v30 }
 0x152   : > { %v2117_v35 = vsub.f32 %v1164_v3, %v2063_v60  ;;  %2064 = vmatpush.msra.mxu0 %v2063_v60  ;;  %2215 = vmatpush.msra.mxu3 %v2063_v60 }
 0x153   : > { %v1212_v39 = vpop.f32.mrf.mxu0 }
 0x154   : > { %v1329_v48 = vpop.f32.mrf.mxu1  ;;  %v1395_v19 = vpop.f32.mrf.mxu2  ;;  %2066 = vmatpush.msra.mxu0 %v4391_v36  ;;  %2171 = vmatpush.msra.mxu2 %v2117_v35  ;;  %v2118_v61 = vand.u32 4294901760, %v2117_v35 }
 0x155   : > { %v1330_v40 = vadd.f32 %v1329_v48, %v1204_v58  ;;  %2217 = vmatpush.msra.mxu3 %v4391_v36 }
 0x156   : > { %2068 = vmatpush.msra.mxu0 %v4393_v49  ;;  %2174 = vmatpush.msra.mxu2 %v2123_v7  ;;  %v2119_v23 = vsub.f32 %v2117_v35, %v2118_v61 }
 0x157   : > { %v1396_v15 = vadd.f32 %v1395_v19, %v1330_v40  ;;  %v1449_v12 = vpop.f32.mrf.mxu3  ;;  %2219 = vmatpush.msra.mxu3 %v4393_v49 }
 0x158   : > { %2070 = vmatpush.msra.mxu0 %v4395_v53  ;;  %2177 = vmatpush.msra.mxu2 %v2129_v13  ;;  %v2120_v33 = vand.u32 4294901760, %v2119_v23 }
 0x159   : > { %v4405_v55 = vadd.f32 %v1449_v12, %v1396_v15  ;;  %2221 = vmatpush.msra.mxu3 %v4395_v53  ;;  %2076 = vmatmul.f32.vlgmr.msra.gmra.mxu0 %v4424_v9 }
 0x15a   : > { %2262 = vmatpush.msrb.mxu0 %v2118_v61  ;;  %2121 = vmatpush.msra.mxu1 %v2120_v33 }
 0x15b   : > { %2180 = vmatpush.msra.mxu2 %v2135_v29  ;;  %2225 = vmatmul.f32.vlgmr.msra.gmra.mxu3 %v4417_v63 }
 0x15c   : > { %2266 = vmatpush.msrb.mxu0 %v2124_v5  ;;  %2127 = vmatpush.msra.mxu1 %v2126_v32 }
 0x15d   : > { %v4414_v25 = vpop.f32.mrf.mxu0  ;;  %2183 = vmatmul.f32.vlgmr.msra.gmra.mxu2 %v4412_v31 }
 0x15e   : > { %2270 = vmatpush.msrb.mxu0 %v2130_v27  ;;  %v1333_v28 = vpop.f32.mrf.mxu1  ;;  %v1400_v47 = vpop.f32.mrf.mxu2  ;;  %2133 = vmatpush.msra.mxu1 %v2132_v44 }
 0x15f   : > { %v1334_v52 = vadd.f32 %v1333_v28, %v1212_v39 }
 0x160   : > { %2274 = vmatpush.msrb.mxu0 %v2136_v34  ;;  %2139 = vmatpush.msra.mxu1 %v2138_v45 }
 0x161   : > { %v1401_v50 = vadd.f32 %v1400_v47, %v1334_v52  ;;  %v1455_v17 = vpop.f32.mrf.mxu3  ;;  %2141 = vmatmul.f32.vlgmr.msra.gmra.mxu1 %v4409_v6  ;;  %2084 = vmatmul.f32.gmra.mxu0 %v4448_v20 }
 0x162   : > { %2305 = vmatpush.msrb.mxu1 %v2063_v60 }
 0x163   : > { %v4429_v10 = vadd.f32 %v1455_v17, %v1401_v50  ;;  %2231 = vmatmul.f32.gmra.mxu3 %v4438_v4 }
 0x164   : > { %2307 = vmatpush.msrb.mxu1 %v4391_v36  ;;  %v2037_v36 = vld [vmem:[#allocation7 + $0x18] sm:$0xff] }
 0x165   : > { %2188 = vmatmul.f32.gmra.mxu2 %v4434_v59  ;;  %v2049_v58 = vsel %vm2038_vm0, %v2037_v36, 0 }
 0x166   : > { %2309 = vmatpush.msrb.mxu1 %v4393_v49  ;;  %v4468_v21 = vand.u32 4294901760, %v2049_v58 }
 0x167   : > { %v4441_v62 = vpop.f32.mrf.mxu0 }
 0x168   : > { %2311 = vmatpush.msrb.mxu1 %v4395_v53  ;;  %v1337_v14 = vpop.f32.mrf.mxu1  ;;  %v1405_v42 = vpop.f32.mrf.mxu2  ;;  %v4472_v53 = vsub.f32 %v2049_v58, %v4468_v21 }
 0x169   : > { %2145 = vmatmul.f32.gmra.mxu1 %v4427_v8  ;;  %2092 = vmatmul.f32.gmra.mxu0 %v4465_v46  ;;  %v1338_v12 = vadd.f32 %v1337_v14, %v4414_v25 }
 0x16a   : > { %v4475_v3 = vand.u32 4294901760, %v4472_v53 }
 0x16b   : > { %v1461_v41 = vpop.f32.mrf.mxu3  ;;  %2237 = vmatmul.f32.gmra.mxu3 %v4458_v24  ;;  %v1406_v22 = vadd.f32 %v1405_v42, %v1338_v12 }
 0x16c   : > { %v2098_v13 = vsub.f32 %v4472_v53, %v4475_v3 }
 0x16d   : > { %2193 = vmatmul.f32.gmra.mxu2 %v4455_v18  ;;  %v1462_v2 = vadd.f32 %v1461_v41, %v1406_v22 }
 0x16e   : > { %v4481_v60 = vand.u32 4294901760, %v2098_v13 }
 0x171   : > { %v1341_v51 = vpop.f32.mrf.mxu1  ;;  %2149 = vmatmul.f32.gmra.mxu1 %v4451_v56  ;;  %2100 = vmatmul.f32.gmra.mxu0 %v4481_v60 }
 0x172   : > { %v1536_v26 = vpop.f32.mrf.mxu0  ;;  %v1410_v49 = vpop.f32.mrf.mxu2  ;;  %v1342_v44 = vadd.f32 %v1341_v51, %v4441_v62 }
 0x173   : > { %2243 = vmatmul.f32.gmra.mxu3 %v4475_v3  ;;  %v1537_v54 = vadd.f32 %v1536_v26, %v4405_v55 }
 0x174   : > { %v1411_v1 = vadd.f32 %v1410_v49, %v1342_v44 }
 0x175   : > { %v1467_v7 = vpop.f32.mrf.mxu3  ;;  %2198 = vmatmul.f32.gmra.mxu2 %v4472_v53 }
 0x176   : > { %v1468_v37 = vadd.f32 %v1467_v7, %v1411_v1 }
 0x179   : > { %2153 = vmatmul.f32.gmra.mxu1 %v4468_v21  ;;  %2276 = vmatmul.f32.vlgmr.msrb.gmra.mxu0 %v4409_v6 }
 0x17b   : > { %v1540_v29 = vpop.f32.mrf.mxu0 }
 0x17c   : > { %v1585_v35 = vpop.f32.mrf.mxu1  ;;  %v1638_v5 = vpop.f32.mrf.mxu2  ;;  %v1541_v47 = vadd.f32 %v1540_v29, %v4429_v10 }
 0x17d   : > { %v1586_v57 = vadd.f32 %v1585_v35, %v1537_v54 }
 0x17f   : > { %v1763_v39 = vpop.f32.mrf.mxu3  ;;  %v1639_v43 = vadd.f32 %v1638_v5, %v1586_v57 }
 0x181   : > { %2313 = vmatmul.f32.vlgmr.msrb.gmra.mxu1 %v4409_v6  ;;  %2280 = vmatmul.f32.gmra.mxu0 %v4427_v8  ;;  %v1764_v13 = vadd.f32 %v1763_v39, %v1639_v43 }
 0x185   : > { %v1544_v48 = vpop.f32.mrf.mxu0 }
 0x186   : > { %v1589_v19 = vpop.f32.mrf.mxu1  ;;  %v1646_v61 = vpop.f32.mrf.mxu2  ;;  %v1545_v45 = vadd.f32 %v1544_v48, %v1462_v2 }
 0x187   : > { %v1590_v25 = vadd.f32 %v1589_v19, %v1541_v47 }
 0x189   : > { %v1767_v27 = vpop.f32.mrf.mxu3  ;;  %2317 = vmatmul.f32.gmra.mxu1 %v4427_v8  ;;  %2284 = vmatmul.f32.gmra.mxu0 %v4451_v56  ;;  %v1647_v14 = vadd.f32 %v1646_v61, %v1590_v25 }
 0x18b   : > { %v1768_v36 = vadd.f32 %v1767_v27, %v1647_v14 }
 0x18f   : > { %v1548_v40 = vpop.f32.mrf.mxu0 }
 0x190   : > { %v1593_v23 = vpop.f32.mrf.mxu1  ;;  %v1654_v38 = vpop.f32.mrf.mxu2  ;;  %v1549_v30 = vadd.f32 %v1548_v40, %v1468_v37 }
 0x191   : > { %2321 = vmatmul.f32.gmra.mxu1 %v4451_v56  ;;  %2288 = vmatmul.f32.gmra.mxu0 %v4468_v21  ;;  %v1594_v50 = vadd.f32 %v1593_v23, %v1545_v45 }
 0x193   : > { %v1771_v34 = vpop.f32.mrf.mxu3  ;;  %v1655_v42 = vadd.f32 %v1654_v38, %v1594_v50 }
 0x195   : > { %v1772_v51 = vadd.f32 %v1771_v34, %v1655_v42 }
 0x199   : > { %v1597_v15 = vpop.f32.mrf.mxu1  ;;  %2325 = vmatmul.f32.gmra.mxu1 %v4468_v21 }
 0x19a   : > { %v1829_v33 = vpop.f32.mrf.mxu0  ;;  %v1662_v16 = vpop.f32.mrf.mxu2  ;;  %v1598_v10 = vadd.f32 %v1597_v15, %v1549_v30 }
 0x19b   : > { %v1830_v26 = vadd.f32 %v1829_v33, %v1764_v13 }
 0x19c   : > { %v1663_v19 = vadd.f32 %v1662_v16, %v1598_v10 }
 0x19d   : > { %v1775_v11 = vpop.f32.mrf.mxu3 }
 0x19e   : > { %v1776_v12 = vadd.f32 %v1775_v11, %v1663_v19 }
 0x1a1   : > { %v1883_v32 = vpop.f32.mrf.mxu1 }
 0x1a2   : > { %v1834_v28 = vpop.f32.mrf.mxu0  ;;  %v1884_v61 = vadd.f32 %v1883_v32, %v1830_v26 }
 0x1a3   : > { %v1835_v29 = vadd.f32 %v1834_v28, %v1768_v36 }
 0x1a4   : > { %v1970_v52 = vpop.f32.mrf.mxu2 }
 0x1a5   : > { %v1971_v22 = vadd.f32 %v1970_v52, %v1884_v61 }
 0x1a6   : > { %v2019_v17 = vpop.f32.mrf.mxu3 }
 0x1a7   : > { %v2020_v44 = vadd.f32 %v2019_v17, %v1971_v22 }
 0x1a9   : > { %v1889_v0 = vpop.f32.mrf.mxu1  ;;  %v2347_v54 = vand.u32 4294901760, %v2020_v44 }
 0x1aa   : > { %v1839_v41 = vpop.f32.mrf.mxu0  ;;  %v1890_v49 = vadd.f32 %v1889_v0, %v1835_v29 }
 0x1ab   : > { %v1840_v55 = vadd.f32 %v1839_v41, %v1772_v51  ;;  %v2413_v57 = vsub.f32 %v2020_v44, %v2347_v54 }
 0x1ac   : > { %v1974_v62 = vpop.f32.mrf.mxu2 }
 0x1ad   : > { %v1975_v7 = vadd.f32 %v1974_v62, %v1890_v49  ;;  %v2414_v42 = vand.u32 4294901760, %v2413_v57 }
 0x1ae   : > { %v2023_v58 = vpop.f32.mrf.mxu3 }
 0x1af   : > { %v2024_v15 = vadd.f32 %v2023_v58, %v1975_v7  ;;  %v2415_v62 = vsub.f32 %v2413_v57, %v2414_v42 }
 0x1b1   : > { %v1895_v48 = vpop.f32.mrf.mxu1  ;;  %v2345_v47 = vand.u32 4294901760, %v2024_v15  ;;  %v2416_v51 = vand.u32 4294901760, %v2415_v62 }
 0x1b2   : > { %v1896_v35 = vadd.f32 %v1895_v48, %v1840_v55  ;;  %v1844_v38 = vpop.f32.mrf.mxu0 }
 0x1b3   : > { %v1845_v34 = vadd.f32 %v1844_v38, %v1776_v12  ;;  %v2407_v1 = vsub.f32 %v2024_v15, %v2345_v47 }
 0x1b4   : > { %v1978_v23 = vpop.f32.mrf.mxu2 }
 0x1b5   : > { %v1979_v5 = vadd.f32 %v1978_v23, %v1896_v35  ;;  %v2408_v0 = vand.u32 4294901760, %v2407_v1 }
 0x1b6   : > { %v2027_v40 = vpop.f32.mrf.mxu3 }
 0x1b7   : > { %v2028_v27 = vadd.f32 %v2027_v40, %v1979_v5  ;;  %v2409_v41 = vsub.f32 %v2407_v1, %v2408_v0 }
 0x1b9   : > { %v1901_v2 = vpop.f32.mrf.mxu1  ;;  %v2343_v28 = vand.u32 4294901760, %v2028_v27  ;;  %v2410_v36 = vand.u32 4294901760, %v2409_v41  ;;  %v2841_v41 = vld [vmem:[%s3140_s7 + $0x30] sm:$0xff] }
 0x1ba   : > { %v1902_v39 = vadd.f32 %v1901_v2, %v1845_v34 }
 0x1bb   : > { %v2401_v32 = vsub.f32 %v2028_v27, %v2343_v28 }
 0x1bc   : > { %v1982_v33 = vpop.f32.mrf.mxu2 }
 0x1bd   : > { %v1983_v45 = vadd.f32 %v1982_v33, %v1902_v39  ;;  %v2402_v52 = vand.u32 4294901760, %v2401_v32 }
 0x1be   : > { %v2031_v16 = vpop.f32.mrf.mxu3 }
 0x1bf   : > { %v2032_v25 = vadd.f32 %v2031_v16, %v1983_v45  ;;  %v2403_v37 = vsub.f32 %v2401_v32, %v2402_v52 }
 0x1c1   : > { %v2341_v50 = vand.u32 4294901760, %v2032_v25  ;;  %v2404_v30 = vand.u32 4294901760, %v2403_v37 }
 0x1c3   : > { %v2395_v11 = vsub.f32 %v2032_v25, %v2341_v50  ;;  %2342 = vmatpush.msrb.mxu2 %v2341_v50  ;;  %2493 = vmatpush.msra.mxu1 %v2341_v50 }
 0x1c5   : > { %v2396_v14 = vand.u32 4294901760, %v2395_v11  ;;  %2344 = vmatpush.msrb.mxu2 %v2343_v28  ;;  %2449 = vmatpush.msra.mxu0 %v2395_v11 }
 0x1c6   : > { %2495 = vmatpush.msra.mxu1 %v2343_v28 }
 0x1c7   : > { %v2397_v17 = vsub.f32 %v2395_v11, %v2396_v14  ;;  %2346 = vmatpush.msrb.mxu2 %v2345_v47  ;;  %2452 = vmatpush.msra.mxu0 %v2401_v32 }
 0x1c8   : > { %2497 = vmatpush.msra.mxu1 %v2345_v47 }
 0x1c9   : > { %2348 = vmatpush.msrb.mxu2 %v2347_v54  ;;  %2455 = vmatpush.msra.mxu0 %v2407_v1  ;;  %v2398_v43 = vand.u32 4294901760, %v2397_v17 }
 0x1ca   : > { %2499 = vmatpush.msra.mxu1 %v2347_v54  ;;  %2354 = vmatmul.f32.vlgmr.msrb.gmra.mxu2 %v4424_v9 }
 0x1cb   : > { %2540 = vmatpush.msra.mxu2 %v2396_v14  ;;  %2399 = vmatpush.msrb.mxu3 %v2398_v43 }
 0x1cc   : > { %2458 = vmatpush.msra.mxu0 %v2413_v57  ;;  %2503 = vmatmul.f32.vlgmr.msra.gmra.mxu1 %v4417_v63 }
 0x1cd   : > { %2544 = vmatpush.msra.mxu2 %v2402_v52  ;;  %2461 = vmatmul.f32.vlgmr.msra.gmra.mxu0 %v4412_v31 }
 0x1ce   : > { %2405 = vmatpush.msrb.mxu3 %v2404_v30 }
 0x1cf   : > { %2548 = vmatpush.msra.mxu2 %v2408_v0 }
 0x1d0   : > { %2411 = vmatpush.msrb.mxu3 %v2410_v36 }
 0x1d1   : > { %2552 = vmatpush.msra.mxu2 %v2414_v42 }
 0x1d2   : > { %2417 = vmatpush.msrb.mxu3 %v2416_v51  ;;  %2362 = vmatmul.f32.gmra.mxu2 %v4448_v20 }
 0x1d3   : > { %2419 = vmatmul.f32.vlgmr.msrb.gmra.mxu3 %v4409_v6 }
 0x1d4   : > { %2583 = vmatpush.msra.mxu3 %v2341_v50  ;;  %2509 = vmatmul.f32.gmra.mxu1 %v4438_v4  ;;  %v2840_v50 = vld [vmem:[%s3140_s7 + $0x20] sm:$0xff] }
 0x1d5   : > { %2466 = vmatmul.f32.gmra.mxu0 %v4434_v59 }
 0x1d6   : > { %2585 = vmatpush.msra.mxu3 %v2343_v28  ;;  %v2077_v31 = vpop.f32.mrf.mxu0  ;;  %v2838_v28 = vld [vmem:[%s3140_s7] sm:$0xff] }
 0x1d8   : > { %2587 = vmatpush.msra.mxu3 %v2345_v47  ;;  %v2839_v47 = vld [vmem:[%s3140_s7 + $0x10] sm:$0xff] }
 0x1da   : > { %2589 = vmatpush.msra.mxu3 %v2347_v54  ;;  %2370 = vmatmul.f32.gmra.mxu2 %v4465_v46 }
 0x1db   : > { %2423 = vmatmul.f32.gmra.mxu3 %v4427_v8 }
 0x1dc   : > { %2515 = vmatmul.f32.gmra.mxu1 %v4458_v24 }
 0x1dd   : > { %2471 = vmatmul.f32.gmra.mxu0 %v4455_v18 }
 0x1de   : > { %v2142_v63 = vpop.f32.mrf.mxu1  ;;  %v2085_v9 = vpop.f32.mrf.mxu0 }
 0x1df   : > { %v2226_v24 = vpop.f32.mrf.mxu3 }
 0x1e0   : > { %v2184_v20 = vpop.f32.mrf.mxu2 }
 0x1e2   : > { %2378 = vmatmul.f32.gmra.mxu2 %v4481_v60  ;;  %v2143_v60 = vadd.f32 %v2142_v63, %v2077_v31 }
 0x1e3   : > { %2427 = vmatmul.f32.gmra.mxu3 %v4451_v56 }
 0x1e4   : > { %2521 = vmatmul.f32.gmra.mxu1 %v4475_v3  ;;  %v2185_v13 = vadd.f32 %v2184_v20, %v2143_v60 }
 0x1e5   : > { %2476 = vmatmul.f32.gmra.mxu0 %v4472_v53 }
 0x1e6   : > { %v2146_v59 = vpop.f32.mrf.mxu1  ;;  %v2093_v4 = vpop.f32.mrf.mxu0  ;;  %v2227_v26 = vadd.f32 %v2226_v24, %v2185_v13 }
 0x1e7   : > { %v2147_v10 = vadd.f32 %v2146_v59, %v2085_v9  ;;  %v2232_v58 = vpop.f32.mrf.mxu3 }
 0x1e8   : > { %v2189_v3 = vpop.f32.mrf.mxu2 }
 0x1e9   : > { %v2190_v29 = vadd.f32 %v2189_v3, %v2147_v10 }
 0x1ea   : > { %2554 = vmatmul.f32.vlgmr.msra.gmra.mxu2 %v4409_v6 }
 0x1eb   : > { %2431 = vmatmul.f32.gmra.mxu3 %v4468_v21 }
 0x1ee   : > { %v2150_v18 = vpop.f32.mrf.mxu1  ;;  %v2101_v46 = vpop.f32.mrf.mxu0 }
 0x1ef   : > { %v2151_v48 = vadd.f32 %v2150_v18, %v2093_v4  ;;  %v2238_v61 = vpop.f32.mrf.mxu3 }
 0x1f0   : > { %v2194_v49 = vpop.f32.mrf.mxu2 }
 0x1f1   : > { %v2195_v23 = vadd.f32 %v2194_v49, %v2151_v48 }
 0x1f2   : > { %2558 = vmatmul.f32.gmra.mxu2 %v4427_v8 }
 0x1f3   : > { %2591 = vmatmul.f32.vlgmr.msra.gmra.mxu3 %v4409_v6  ;;  %v2239_v40 = vadd.f32 %v2238_v61, %v2195_v23 }
 0x1f6   : > { %v2154_v53 = vpop.f32.mrf.mxu1  ;;  %v2277_v6 = vpop.f32.mrf.mxu0 }
 0x1f7   : > { %v2278_v19 = vadd.f32 %v2277_v6, %v2227_v26  ;;  %v2155_v12 = vadd.f32 %v2154_v53, %v2101_v46  ;;  %v2244_v44 = vpop.f32.mrf.mxu3 }
 0x1f8   : > { %v2199_v22 = vpop.f32.mrf.mxu2 }
 0x1f9   : > { %v2200_v2 = vadd.f32 %v2199_v22, %v2155_v12 }
 0x1fa   : > { %2562 = vmatmul.f32.gmra.mxu2 %v4451_v56 }
 0x1fb   : > { %2595 = vmatmul.f32.gmra.mxu3 %v4427_v8  ;;  %v2233_v8 = vadd.f32 %v2232_v58, %v2190_v29  ;;  %v2245_v32 = vadd.f32 %v2244_v44, %v2200_v2 }
 0x1fe   : > { %v2314_v55 = vpop.f32.mrf.mxu1  ;;  %v2281_v35 = vpop.f32.mrf.mxu0 }
 0x1ff   : > { %v2282_v7 = vadd.f32 %v2281_v35, %v2233_v8  ;;  %v2315_v38 = vadd.f32 %v2314_v55, %v2278_v19 }
 0x201   : > { %v2607_v27 = vmul.f32 0.037037037, %v2315_v38 }
 0x202   : > { %2566 = vmatmul.f32.gmra.mxu2 %v4468_v21 }
 0x203   : > { %2599 = vmatmul.f32.gmra.mxu3 %v4451_v56  ;;  %v2615_v33 = vsub.f32 %v2838_v28, %v2607_v27 }
 0x205   : > { %v2623_v25 = vand.u32 2147483647, %v2615_v33 }
 0x206   : > { %v2318_v56 = vpop.f32.mrf.mxu1  ;;  %v2285_v15 = vpop.f32.mrf.mxu0 }
 0x207   : > { %v2319_v5 = vadd.f32 %v2318_v56, %v2282_v7  ;;  %v2286_v39 = vadd.f32 %v2285_v15, %v2239_v40 }
 0x209   : > { %v2609_v34 = vmul.f32 0.037037037, %v2319_v5 }
 0x20b   : > { %2603 = vmatmul.f32.gmra.mxu3 %v4468_v21  ;;  %v2617_v45 = vsub.f32 %v2839_v47, %v2609_v34  ;;  %v2842_v47 = vld [vmem:[%s3140_s7 + $0x18] sm:$0xff] }
 0x20d   : > { %v2625_v1 = vand.u32 2147483647, %v2617_v45 }
 0x20e   : > { %v2322_v21 = vpop.f32.mrf.mxu1  ;;  %v2289_v11 = vpop.f32.mrf.mxu0 }
 0x20f   : > { %v2323_v16 = vadd.f32 %v2322_v21, %v2286_v39  ;;  %v2290_v52 = vadd.f32 %v2289_v11, %v2245_v32  ;;  %v2631_v0 = vadd.f32 %v2625_v1, %v2623_v25  ;;  %v2844_v25 = vld [vmem:[%s3140_s7 + $0x28] sm:$0xff] }
 0x211   : > { %v2611_v54 = vmul.f32 0.037037037, %v2323_v16 }
 0x213   : > { %v2619_v57 = vsub.f32 %v2840_v50, %v2611_v54  ;;  %v2843_v54 = vld [vmem:[%s3140_s7 + $0x8] sm:$0xff] }
 0x215   : > { %v2627_v17 = vand.u32 2147483647, %v2619_v57 }
 0x216   : > { %v2326_v14 = vpop.f32.mrf.mxu1 }
 0x217   : > { %v2327_v37 = vadd.f32 %v2326_v14, %v2290_v52  ;;  %v2632_v43 = vadd.f32 %v2631_v0, %v2627_v17 }
 0x219   : > { %v2613_v42 = vmul.f32 0.037037037, %v2327_v37 }
 0x21b   : > { %v2621_v30 = vsub.f32 %v2841_v41, %v2613_v42  ;;  %v2845_v42 = vld [vmem:[%s3140_s7 + $0x38] sm:$0xff] }
 0x21d   : > { %v2629_v62 = vand.u32 2147483647, %v2621_v30 }
 0x21f   : > { %v2633_v36 = vadd.f32 %v2632_v43, %v2629_v62 }
 0x221   : > { %2637 = vst [vmem:[%s4526_s23] sm:$0xff] %v2633_v36 }
 0x249   : > { %v2504_v24 = vpop.f32.mrf.mxu1 }
 0x24a   : > { %v2462_v20 = vpop.f32.mrf.mxu0 }
 0x24d   : > { %v2355_v51 = vpop.f32.mrf.mxu2 }
 0x251   : > { %v2510_v60 = vpop.f32.mrf.mxu1 }
 0x252   : > { %v2467_v53 = vpop.f32.mrf.mxu0 }
 0x255   : > { %v2363_v63 = vpop.f32.mrf.mxu2 }
 0x256   : > { %v2420_v31 = vpop.f32.mrf.mxu3 }
 0x257   : > { %v2421_v13 = vadd.f32 %v2420_v31, %v2355_v51 }
 0x259   : > { %v2463_v49 = vadd.f32 %v2462_v20, %v2421_v13  ;;  %v2516_v8 = vpop.f32.mrf.mxu1 }
 0x25a   : > { %v2472_v29 = vpop.f32.mrf.mxu0 }
 0x25b   : > { %v2505_v61 = vadd.f32 %v2504_v24, %v2463_v49 }
 0x25d   : > { %v2371_v59 = vpop.f32.mrf.mxu2 }
 0x25e   : > { %v2424_v9 = vpop.f32.mrf.mxu3 }
 0x25f   : > { %v2425_v58 = vadd.f32 %v2424_v9, %v2363_v63 }
 0x261   : > { %v2468_v26 = vadd.f32 %v2467_v53, %v2425_v58  ;;  %v2522_v21 = vpop.f32.mrf.mxu1 }
 0x262   : > { %v2477_v40 = vpop.f32.mrf.mxu0 }
 0x263   : > { %v2511_v19 = vadd.f32 %v2510_v60, %v2468_v26 }
 0x265   : > { %v2379_v18 = vpop.f32.mrf.mxu2 }
 0x266   : > { %v2428_v4 = vpop.f32.mrf.mxu3 }
 0x267   : > { %v2429_v55 = vadd.f32 %v2428_v4, %v2371_v59 }
 0x269   : > { %v2473_v35 = vadd.f32 %v2472_v29, %v2429_v55 }
 0x26b   : > { %v2517_v12 = vadd.f32 %v2516_v8, %v2473_v35 }
 0x26d   : > { %v2555_v3 = vpop.f32.mrf.mxu2 }
 0x26e   : > { %v2432_v46 = vpop.f32.mrf.mxu3  ;;  %v2556_v38 = vadd.f32 %v2555_v3, %v2505_v61 }
 0x26f   : > { %v2433_v56 = vadd.f32 %v2432_v46, %v2379_v18 }
 0x271   : > { %v2478_v39 = vadd.f32 %v2477_v40, %v2433_v56 }
 0x273   : > { %v2523_v16 = vadd.f32 %v2522_v21, %v2478_v39 }
 0x275   : > { %v2559_v6 = vpop.f32.mrf.mxu2 }
 0x276   : > { %v2592_v10 = vpop.f32.mrf.mxu3  ;;  %v2560_v23 = vadd.f32 %v2559_v6, %v2511_v19 }
 0x277   : > { %v2593_v22 = vadd.f32 %v2592_v10, %v2556_v38 }
 0x279   : > { %v2608_v44 = vmul.f32 0.037037037, %v2593_v22 }
 0x27b   : > { %v2616_v32 = vsub.f32 %v2843_v54, %v2608_v44 }
 0x27d   : > { %v2563_v7 = vpop.f32.mrf.mxu2  ;;  %v2624_v14 = vand.u32 2147483647, %v2616_v32 }
 0x27e   : > { %v2596_v48 = vpop.f32.mrf.mxu3  ;;  %v2564_v27 = vadd.f32 %v2563_v7, %v2517_v12 }
 0x27f   : > { %v2597_v5 = vadd.f32 %v2596_v48, %v2560_v23 }
 0x281   : > { %v2610_v15 = vmul.f32 0.037037037, %v2597_v5 }
 0x283   : > { %v2618_v45 = vsub.f32 %v2842_v47, %v2610_v15 }
 0x285   : > { %v2567_v33 = vpop.f32.mrf.mxu2  ;;  %v2626_v11 = vand.u32 2147483647, %v2618_v45 }
 0x286   : > { %v2600_v34 = vpop.f32.mrf.mxu3  ;;  %v2568_v50 = vadd.f32 %v2567_v33, %v2523_v16 }
 0x287   : > { %v2601_v2 = vadd.f32 %v2600_v34, %v2564_v27  ;;  %v2634_v37 = vadd.f32 %v2626_v11, %v2624_v14 }
 0x289   : > { %v2612_v28 = vmul.f32 0.037037037, %v2601_v2 }
 0x28b   : > { %v2620_v1 = vsub.f32 %v2844_v25, %v2612_v28 }
 0x28d   : > { %v2628_v0 = vand.u32 2147483647, %v2620_v1 }
 0x28e   : > { %v2604_v57 = vpop.f32.mrf.mxu3 }
 0x28f   : > { %v2605_v52 = vadd.f32 %v2604_v57, %v2568_v50  ;;  %v2635_v41 = vadd.f32 %v2634_v37, %v2628_v0 }
 0x291   : > { %v2614_v17 = vmul.f32 0.037037037, %v2605_v52 }
 0x293   : > { %v2622_v43 = vsub.f32 %v2845_v42, %v2614_v17 }
 0x295   : > { %v2630_v30 = vand.u32 2147483647, %v2622_v43 }
 0x297   : > { %v2636_v62 = vadd.f32 %v2635_v41, %v2630_v30 }
 0x299   : > { %2638 = vst [vmem:[%s4526_s23 + $0x8] sm:$0xff] %v2636_v62 }
 0x29a   : > { %2963 = shalt.err (!%p2960_p10)
}
 0x29b   : > { %2777 = dma.vmem_to_hbm [thread:$0]  (%p3106_p5), %s2654_s5, 256, %s2656_s6, %s2640_s16  }
 0x29c PF: > { %s2667_s20 = sand.u32 1, %s2994_s12   ;;  %p4794_p12 = scmp.ge.s32.totalorder %s3006_s15, 2 }
 0x29d   : > { %s2668_s27 = scalar_lea.sflag [#allocation4], %s2667_s20 }
 0x29e   : > { %p2791_p13 = pnand %p4794_p12, %p3069_p6 }
 0x2a0   : > { %p2792_p0 = pneg %p2791_p13 }
 0x2a2   : > { %2989 = dma.done.wait (%p2792_p0), %s2668_s27, 256  }
 0x2a3   : > { %2991 = vsyncadd (%p2792_p0), %s2668_s27, 4294967040  ;;  %p17_p3 = scmp.ge.s32.totalorder %s3093_s8, 4   ;;  %s4795_s12 = smov %s2998_s13 }
 0x2a4   : > { %s4796_s13 = smov %s3002_s14  ;;  %s4797_s14 = smov %s3102_s11 }
 0x2a5   : > { %s4798_s15 = smov %s3093_s8  ;;  %19 = sbr.rel (!%p17_p3) target bundleno = 6 (0x6), region = 85 }
 0x2aa   :  { %2674 = vsyncpa [#allocation3], 1 }
 0x2ab   :  { %2676 = vsyncpa [#allocation3 + $0x1], 1 }
 0x2ac   :  { %2677 = vsyncpa [#allocation6], 1 }
 0x2ad   :  { %2678 = vsyncpa [#allocation4], 1 }
 0x2ae   :  { %2680 = vsyncpa [#allocation4 + $0x1], 1 }

</bundles_post_ra>
